<compile_context>
chip_gen: v6e
topology: v6e:2x2x1
jax: 0.10.0
libtpu: 0.0.40
codegen_flags: <defaults>
</compile_context>

<pallas_src>
import functools

import jax
import jax.numpy as jnp
from jax import lax
from jax.experimental import pallas as pl
from jax.experimental.pallas import tpu as pltpu

HIDDEN = 256
BN_EPS = 1e-5
_VMEM_LIMIT = 32 * 1024 * 1024  # safe on v5e/v6e (128 MiB phys) and v7x (64 MiB phys)


# ---------------------------------------------------------------------------
# Fused kernel.  Grid (2, num_tiles):
#   phase 0: accumulate global per-feature sum / sumsq of h1 = w1^T @ x^T
#   phase 1: fold stats -> (scale, shift) once, then BN+ReLU, fc2+ReLU, v_head.
# Single-pass variant (two_phase=False) does everything in one grid step.
# Packed param slab p_ref (H, 8) columns: 0=gamma, 1=beta, 2=b2, 3=w3, 4=b3.
# ---------------------------------------------------------------------------
def _critic_kernel(xT_ref, w1T_ref, w2T_ref, p_ref, out_ref, s0_ref, s1_ref, *,
                   inv_n, two_phase):
    # fc1 on the MXU (bf16 in / f32 acc).  No b1: BatchNorm right after fc1 makes
    # the bias a no-op, and without it zero-padded batch columns contribute
    # exactly 0 to the statistics (no padding mask needed).
    h1 = jnp.dot(w1T_ref[...], xT_ref[...],
                 preferred_element_type=jnp.float32)              # (H, TB) f32

    def fold_stats(s, ss):
        mean = s * jnp.float32(inv_n)
        var = ss * jnp.float32(inv_n) - mean * mean               # biased (train mode)
        inv_std = lax.rsqrt(var + BN_EPS)
        scale = p_ref[:, 0:1] * inv_std                           # gamma / std
        shift = p_ref[:, 1:2] - mean * scale                      # beta - mean*scale
        return scale, shift

    def forward(scale, shift):
        # BN (folded) + ReLU on the VPU; columns broadcast along the batch lanes.
        a1 = jnp.maximum(h1 * scale + shift, 0.0)                 # (H, TB) f32
        # fc2 on the MXU (bf16 in / f32 acc) + bias + ReLU.
        h2 = jnp.dot(w2T_ref[...], a1.astype(jnp.bfloat16),
                     preferred_element_type=jnp.float32)          # (H, TB) f32
        a2 = jnp.maximum(h2 + p_ref[:, 2:3], 0.0)
        # v_head (N=1): VPU multiply + sublane reduction -> lane-dense (1, TB) row.
        v = jnp.sum(a2 * p_ref[:, 3:4], axis=0, keepdims=True)    # (1, TB)
        out_ref[...] = (v + p_ref[0:1, 4:5]).astype(out_ref.dtype)  # + b3

    if not two_phase:
        # Whole (padded) batch fits one tile: true single-pass kernel.
        s = jnp.sum(h1, axis=1, keepdims=True)                    # (H, 1)
        ss = jnp.sum(h1 * h1, axis=1, keepdims=True)              # (H, 1)
        scale, shift = fold_stats(s, ss)
        forward(scale, shift)
        return

    phase = pl.program_id(0)
    i = pl.program_id(1)

    @pl.when(phase == 0)
    def _accumulate_stats():
        @pl.when(i == 0)
        def _zero():
            s0_ref[...] = jnp.zeros_like(s0_ref)
            s1_ref[...] = jnp.zeros_like(s1_ref)

        # Full-block accumulator updates (no single-sublane read-modify-writes).
        s0_ref[...] += jnp.sum(h1, axis=1, keepdims=True)
        s1_ref[...] += jnp.sum(h1 * h1, axis=1, keepdims=True)

    @pl.when(phase == 1)
    def _normalize_and_head():
        @pl.when(i == 0)
        def _fold_once():
            # Convert global (sum, sumsq) into folded BN (scale, shift) once,
            # reusing the same scratch; later tiles just read it.
            scale, shift = fold_stats(s0_ref[...], s1_ref[...])
            s0_ref[...] = scale
            s1_ref[...] = shift

        forward(s0_ref[...], s1_ref[...])


# ---------------------------------------------------------------------------
# Wrapper
# ---------------------------------------------------------------------------
def critic_net_forward(x, params, *, block_batch=512):
    """x: (B, state_size) float32 -> (B, 1) float32."""
    w1, b1, gamma, beta, w2, b2, w3, b3 = params
    del b1  # BN right after fc1 cancels the fc1 bias exactly (see kernel comment).
    B, K = x.shape
    H = w1.shape[1]

    # Lane-align the fc1 contraction dim; batch tile is a multiple of 128 lanes.
    K_pad = 128 * pl.cdiv(K, 128)
    tb_cap = max(128, 128 * (int(block_batch) // 128))
    TB = min(tb_cap, 128 * pl.cdiv(B, 128))
    num_tiles = pl.cdiv(B, TB)
    B_pad = num_tiles * TB
    two_phase = num_tiles > 1

    # bf16-only padding / transpose of x (no padded f32 intermediate).
    x_bf16 = x.astype(jnp.bfloat16)
    if B_pad != B or K_pad != K:
        x_bf16 = jnp.pad(x_bf16, ((0, B_pad - B), (0, K_pad - K)))
    xT = x_bf16.T                                                  # (K_pad, B_pad)

    # Transposed weights (bf16) and one packed f32 param slab.
    w1T = jnp.pad(w1, ((0, K_pad - K), (0, 0))).astype(jnp.bfloat16).T   # (H, K_pad)
    w2T = w2.astype(jnp.bfloat16).T                                      # (H, H)
    zeros_h = jnp.zeros((H,), jnp.float32)
    packed = jnp.stack(
        [gamma.reshape(-1).astype(jnp.float32),
         beta.reshape(-1).astype(jnp.float32),
         b2.reshape(-1).astype(jnp.float32),
         w3.reshape(-1).astype(jnp.float32),
         jnp.full((H,), b3.reshape(()), jnp.float32),
         zeros_h, zeros_h, zeros_h], axis=1)                             # (H, 8)

    grid = (2, num_tiles) if two_phase else (1, 1)
    n_passes = 2 if two_phase else 1

    flops = 2 * B_pad * H * (n_passes * K_pad + H + 1)
    bytes_accessed = (n_passes * K_pad * B_pad * 2      # x^T streamed once per phase
                      + H * K_pad * 2 + H * H * 2       # resident weights (bf16)
                      + H * 8 * 4                        # packed params
                      + B_pad * 4)                       # output row

    out = pl.pallas_call(
        functools.partial(_critic_kernel, inv_n=1.0 / float(B), two_phase=two_phase),
        out_shape=jax.ShapeDtypeStruct((1, B_pad), jnp.float32),
        grid_spec=pltpu.PrefetchScalarGridSpec(
            num_scalar_prefetch=0,
            grid=grid,
            in_specs=[
                pl.BlockSpec((K_pad, TB), lambda p, i: (0, i)),   # x^T tile (streamed)
                pl.BlockSpec((H, K_pad), lambda p, i: (0, 0)),    # w1^T (VMEM-resident)
                pl.BlockSpec((H, H), lambda p, i: (0, 0)),        # w2^T (VMEM-resident)
                pl.BlockSpec((H, 8), lambda p, i: (0, 0)),        # packed params
            ],
            # Phase 0 never writes the output; mapping it to a constant block there
            # avoids redundant garbage writebacks.  Phase 1 writes tile i.
            out_specs=pl.BlockSpec((1, TB), lambda p, i: (0, i * p)),
            scratch_shapes=[pltpu.VMEM((H, 1), jnp.float32),   # sum   -> BN scale
                            pltpu.VMEM((H, 1), jnp.float32)],  # sumsq -> BN shift
        ),
        compiler_params=pltpu.CompilerParams(
            dimension_semantics=("arbitrary", "arbitrary"),
            vmem_limit_bytes=_VMEM_LIMIT),
        cost_estimate=pl.CostEstimate(
            flops=int(flops), transcendentals=H, bytes_accessed=int(bytes_accessed)),
    )(xT, w1T, w2T, packed)

    return out[0, :B].reshape(B, 1)


# ---------------------------------------------------------------------------
# Init + references
# ---------------------------------------------------------------------------
def init_params(key, state_size):
    """Deterministic init matching PyTorch nn.Linear / nn.BatchNorm1d defaults."""
    def linear(key, fan_in, fan_out):
        kw, kb = jax.random.split(key)
        bound = 1.0 / jnp.sqrt(jnp.float32(fan_in))
        w = jax.random.uniform(kw, (fan_in, fan_out), jnp.float32, -bound, bound)
        b = jax.random.uniform(kb, (1, fan_out), jnp.float32, -bound, bound)
        return w, b

    k1, k2, k3 = jax.random.split(key, 3)
    w1, b1 = linear(k1, state_size, HIDDEN)
    w2, b2 = linear(k2, HIDDEN, HIDDEN)
    w3, b3 = linear(k3, HIDDEN, 1)
    gamma = jnp.ones((1, HIDDEN), jnp.float32)   # bn1.weight
    beta = jnp.zeros((1, HIDDEN), jnp.float32)   # bn1.bias
    return (w1, b1, gamma, beta, w2, b2, w3, b3)


def _reference_forward_f32(x, params):
    """Plain-JAX f32 reference mirroring the PyTorch forward (training-mode BN)."""
    w1, b1, gamma, beta, w2, b2, w3, b3 = params
    h1 = x @ w1 + b1
    mean = jnp.mean(h1, axis=0, keepdims=True)
    var = jnp.mean((h1 - mean) ** 2, axis=0, keepdims=True)
    a1 = jnp.maximum((h1 - mean) / jnp.sqrt(var + BN_EPS) * gamma + beta, 0.0)
    a2 = jnp.maximum(a1 @ w2 + b2, 0.0)
    return a2 @ w3 + b3


def _reference_forward_bf16(x, params):
    """Reference using the kernel's numerics (bf16 matmul inputs, f32 accum/BN)."""
    w1, b1, gamma, beta, w2, b2, w3, b3 = params
    h1 = jnp.dot(x.astype(jnp.bfloat16), w1.astype(jnp.bfloat16),
                 preferred_element_type=jnp.float32) + b1
    mean = jnp.mean(h1, axis=0, keepdims=True)
    var = jnp.mean((h1 - mean) ** 2, axis=0, keepdims=True)
    a1 = jnp.maximum((h1 - mean) * lax.rsqrt(var + BN_EPS) * gamma + beta, 0.0)
    h2 = jnp.dot(a1.astype(jnp.bfloat16), w2.astype(jnp.bfloat16),
                 preferred_element_type=jnp.float32) + b2
    a2 = jnp.maximum(h2, 0.0)
    return a2 @ w3 + b3


if __name__ == "__main__":
    key = jax.random.PRNGKey(0)
    k_param, k_x = jax.random.split(key)

    state_size = 33      # real Reacher state size; padded to 128 lanes in the wrapper
    params = init_params(k_param, state_size)

    # Case 1: small batch -> one tile -> single-pass kernel (grid (1,1)).
    x_small = jax.random.normal(k_x, (100, state_size), jnp.float32)
    out_small = jax.block_until_ready(critic_net_forward(x_small, params))

    # Case 2: batch > tile -> fused two-phase kernel (3 tiles, padded last tile).
    # block_batch=128 is deliberately small so the demo exercises multi-tile BN
    # accumulation; the default (512) is the performance-oriented choice.
    x_big = jax.random.normal(jax.random.fold_in(k_x, 1), (300, state_size),
                              jnp.float32)
    out_big = jax.block_until_ready(
        critic_net_forward(x_big, params, block_batch=128))

    for x, out in ((x_small, out_small), (x_big, out_big)):
        ref_bf16 = _reference_forward_bf16(x, params)   # kernel numerics
        ref_f32 = _reference_forward_f32(x, params)     # module semantics in f32
        assert out.shape == (x.shape[0], 1)
        assert jnp.allclose(out, ref_bf16, atol=5e-3, rtol=5e-3)
        assert jnp.allclose(out, ref_f32, atol=1e-1, rtol=1e-1)

    print("KERNEL_OK")
</pallas_src>

<mosaic_0001>
module attributes {stable_mosaic.version = 11 : i64} {
  func.func @_critic_kernel(%arg0: i32, %arg1: i32, %arg2: memref<128x128xbf16, #tpu.memory_space<vmem>>, %arg3: memref<256x128xbf16, #tpu.memory_space<vmem>>, %arg4: memref<256x256xbf16, #tpu.memory_space<vmem>>, %arg5: memref<256x8xf32, #tpu.memory_space<vmem>>, %arg6: memref<1x128xf32, #tpu.memory_space<vmem>>, %arg7: memref<256x1xf32, #tpu.memory_space<vmem>>, %arg8: memref<256x1xf32, #tpu.memory_space<vmem>>) attributes {dimension_semantics = [#tpu.dimension_semantics<arbitrary>, #tpu.dimension_semantics<arbitrary>], iteration_bounds = array<i64: 1, 1>, scalar_prefetch = 0 : i64, scratch_operands = 2 : i64, tpu.core_type = #tpu.core_type<tc>, window_params = [{transform_indices = @transform_0, window_bounds = array<i64: 128, 128>}, {pipeline_mode = #tpu.pipeline_mode<synchronous>, transform_indices = @transform_1, window_bounds = array<i64: 256, 128>}, {pipeline_mode = #tpu.pipeline_mode<synchronous>, transform_indices = @transform_2, window_bounds = array<i64: 256, 256>}, {pipeline_mode = #tpu.pipeline_mode<synchronous>, transform_indices = @transform_3, window_bounds = array<i64: 256, 8>}, {transform_indices = @transform_4, window_bounds = array<i64: 1, 128>}]} {
    %c0 = arith.constant 0 : index
    %c0_0 = arith.constant 0 : index
    %0 = vector.load %arg3[%c0, %c0_0] : memref<256x128xbf16, #tpu.memory_space<vmem>>, vector<256x128xbf16>
    %c0_1 = arith.constant 0 : index
    %c0_2 = arith.constant 0 : index
    %1 = vector.load %arg2[%c0_1, %c0_2] : memref<128x128xbf16, #tpu.memory_space<vmem>>, vector<128x128xbf16>
    %cst = arith.constant dense<0.000000e+00> : vector<256x128xf32>
    %2 = tpu.matmul %0, %1, %cst {dimension_numbers = #tpu.dot_dimension_numbers<[1], [0], [0], [1], [0, 0, 1, 1], [], []>} : vector<256x128xbf16>, vector<128x128xbf16>, vector<256x128xf32> -> vector<256x128xf32>
    %cst_3 = arith.constant dense<0.000000e+00> : vector<256xf32>
    %3 = vector.multi_reduction <add>, %2, %cst_3 [1] : vector<256x128xf32> to vector<256xf32>
    %4 = vector.shape_cast %3 : vector<256xf32> to vector<256x1xf32>
    %5 = arith.mulf %2, %2 : vector<256x128xf32>
    %cst_4 = arith.constant dense<0.000000e+00> : vector<256xf32>
    %6 = vector.multi_reduction <add>, %5, %cst_4 [1] : vector<256x128xf32> to vector<256xf32>
    %7 = vector.shape_cast %6 : vector<256xf32> to vector<256x1xf32>
    %cst_5 = arith.constant 0.00999999977 : f32
    %8 = vector.broadcast %cst_5 : f32 to vector<256x1xf32>
    %9 = arith.mulf %4, %8 : vector<256x1xf32>
    %cst_6 = arith.constant 0.00999999977 : f32
    %10 = vector.broadcast %cst_6 : f32 to vector<256x1xf32>
    %11 = arith.mulf %7, %10 : vector<256x1xf32>
    %12 = arith.mulf %9, %9 : vector<256x1xf32>
    %13 = arith.subf %11, %12 : vector<256x1xf32>
    %cst_7 = arith.constant 9.99999974E-6 : f32
    %14 = vector.broadcast %cst_7 : f32 to vector<256x1xf32>
    %15 = arith.addf %13, %14 : vector<256x1xf32>
    %16 = math.rsqrt %15 : vector<256x1xf32>
    %c0_8 = arith.constant 0 : index
    %c0_9 = arith.constant 0 : index
    %17 = vector.load %arg5[%c0_8, %c0_9] : memref<256x8xf32, #tpu.memory_space<vmem>>, vector<256x1xf32>
    %18 = arith.mulf %17, %16 : vector<256x1xf32>
    %c0_10 = arith.constant 0 : index
    %c1 = arith.constant 1 : index
    %19 = vector.load %arg5[%c0_10, %c1] : memref<256x8xf32, #tpu.memory_space<vmem>>, vector<256x1xf32>
    %20 = arith.mulf %9, %18 : vector<256x1xf32>
    %21 = arith.subf %19, %20 : vector<256x1xf32>
    %22 = vector.broadcast %18 : vector<256x1xf32> to vector<256x128xf32>
    %23 = arith.mulf %2, %22 : vector<256x128xf32>
    %24 = vector.broadcast %21 : vector<256x1xf32> to vector<256x128xf32>
    %25 = arith.addf %23, %24 : vector<256x128xf32>
    %cst_11 = arith.constant 0.000000e+00 : f32
    %26 = vector.broadcast %cst_11 : f32 to vector<256x128xf32>
    %27 = arith.maximumf %25, %26 : vector<256x128xf32>
    %c0_12 = arith.constant 0 : index
    %c0_13 = arith.constant 0 : index
    %28 = vector.load %arg4[%c0_12, %c0_13] : memref<256x256xbf16, #tpu.memory_space<vmem>>, vector<256x256xbf16>
    %29 = arith.truncf %27 : vector<256x128xf32> to vector<256x128xbf16>
    %cst_14 = arith.constant dense<0.000000e+00> : vector<256x128xf32>
    %30 = tpu.matmul %28, %29, %cst_14 {dimension_numbers = #tpu.dot_dimension_numbers<[1], [0], [0], [1], [0, 0, 1, 1], [], []>} : vector<256x256xbf16>, vector<256x128xbf16>, vector<256x128xf32> -> vector<256x128xf32>
    %c0_15 = arith.constant 0 : index
    %c2 = arith.constant 2 : index
    %31 = vector.load %arg5[%c0_15, %c2] : memref<256x8xf32, #tpu.memory_space<vmem>>, vector<256x1xf32>
    %32 = vector.broadcast %31 : vector<256x1xf32> to vector<256x128xf32>
    %33 = arith.addf %30, %32 : vector<256x128xf32>
    %cst_16 = arith.constant 0.000000e+00 : f32
    %34 = vector.broadcast %cst_16 : f32 to vector<256x128xf32>
    %35 = arith.maximumf %33, %34 : vector<256x128xf32>
    %c0_17 = arith.constant 0 : index
    %c3 = arith.constant 3 : index
    %36 = vector.load %arg5[%c0_17, %c3] : memref<256x8xf32, #tpu.memory_space<vmem>>, vector<256x1xf32>
    %37 = vector.broadcast %36 : vector<256x1xf32> to vector<256x128xf32>
    %38 = arith.mulf %35, %37 : vector<256x128xf32>
    %cst_18 = arith.constant dense<0.000000e+00> : vector<128xf32>
    %39 = vector.multi_reduction <add>, %38, %cst_18 [0] : vector<256x128xf32> to vector<128xf32>
    %40 = vector.shape_cast %39 : vector<128xf32> to vector<1x128xf32>
    %c0_19 = arith.constant 0 : index
    %c4 = arith.constant 4 : index
    %41 = vector.load %arg5[%c0_19, %c4] : memref<256x8xf32, #tpu.memory_space<vmem>>, vector<1x1xf32>
    %42 = vector.broadcast %41 : vector<1x1xf32> to vector<1x128xf32>
    %43 = arith.addf %40, %42 : vector<1x128xf32>
    %c0_20 = arith.constant 0 : index
    %c0_21 = arith.constant 0 : index
    %44 = vector.load %arg6[%c0_20, %c0_21] : memref<1x128xf32, #tpu.memory_space<vmem>>, vector<1x128xf32>
    tpu.vector_store %arg6[%c0_20, %c0_21], %43 {strides = array<i32>} : memref<1x128xf32, #tpu.memory_space<vmem>>, vector<1x128xf32>,
    return
  }
  func.func @transform_0(%arg0: i32, %arg1: i32) -> (i32, i32) {
    %c0_i32 = arith.constant 0 : i32
    %c0_i32_0 = arith.constant 0 : i32
    return %c0_i32, %arg1 : i32, i32
  }
  func.func @transform_1(%arg0: i32, %arg1: i32) -> (i32, i32) {
    %c0_i32 = arith.constant 0 : i32
    %c0_i32_0 = arith.constant 0 : i32
    %c0_i32_1 = arith.constant 0 : i32
    return %c0_i32, %c0_i32_0 : i32, i32
  }
  func.func @transform_2(%arg0: i32, %arg1: i32) -> (i32, i32) {
    %c0_i32 = arith.constant 0 : i32
    %c0_i32_0 = arith.constant 0 : i32
    %c0_i32_1 = arith.constant 0 : i32
    return %c0_i32, %c0_i32_0 : i32, i32
  }
  func.func @transform_3(%arg0: i32, %arg1: i32) -> (i32, i32) {
    %c0_i32 = arith.constant 0 : i32
    %c0_i32_0 = arith.constant 0 : i32
    %c0_i32_1 = arith.constant 0 : i32
    return %c0_i32, %c0_i32_0 : i32, i32
  }
  func.func @transform_4(%arg0: i32, %arg1: i32) -> (i32, i32) {
    %0 = arith.muli %arg1, %arg0 : i32
    %c0_i32 = arith.constant 0 : i32
    %c0_i32_0 = arith.constant 0 : i32
    return %c0_i32, %0 : i32, i32
  }
}

</mosaic_0001>

<bundles_post_ra>
// kernel: tpu_custom_call.1
= control target key start
LH: loop header
LB: loop body
LE: loop exit
PB: predicated region body
PF: predicated region fallthrough
CT: control target
= control target key end

     0   :  { %9 = vsyncpa [#allocation5], 0  ;;  %s3757_s0 = inlined_call_operand.hbm [shape: bf16[128,128], index: 0, kind: input, shape index: {}]   ;;  %s3758_s1 = inlined_call_operand.hbm [shape: bf16[256,128], index: 1, kind: input, shape index: {}]   ;;  %s3759_s2 = inlined_call_operand.vmem [shape: bf16[256,256], index: 2, kind: input, shape index: {}]   ;;  %s3760_s3 = inlined_call_operand.vmem [shape: f32[256,8], index: 3, kind: input, shape index: {}]   ;;  %s3761_s4 = inlined_call_operand.hbm [shape: f32[1,128], index: 4, kind: output, shape index: {}]  }
   0x1   :  { %10 = vsyncpa [#allocation8], 0 }
   0x2   :  { %11 = vsyncpa [#allocation6], 0  ;;  %s2695_s15 = smov [#allocation4]  }
   0x3   :  { %s17_s16 = sshll.u32 %s2695_s15, 4  ;;  %s18_s16 = int_to_ptr.vmem [resolvable:$true] %s17_s16 }
   0x4   :  { %s2637_s17 = scalar_lea.vmem %s18_s16, 1024  ;;  %p2642_p1 = scmp.lt.s32.totalorder %s18_s16, %s18_s16 }
   0x5   :  { %p2638_p0 = scmp.ne.s32.totalorder %s18_s16, %s2637_s17  ;;  %p2643_p2 = scmp.lt.s32.totalorder %s2637_s17, %s2637_s17 }
   0x7   :  { %p2644_p3 = por %p2643_p2, %p2642_p1 }
   0x9   :  { %p2645_p4 = pnand %p2644_p3, %p2638_p0 }
   0xb   :  { %2648 = shalt.err (!%p2645_p4)
}
   0xc   :  { %s2696_s18 = smov 64   ;;  %s2697_s19 = smov 4  }
   0xd   :  { %23 = dma.hbm_to_vmem [thread:$0]  %s3757_s0, 1024, %s18_s16, [#allocation5], %s2696_s18, %s2696_s18, %s2697_s19  }
   0xe   :  { %s2698_s22 = smov [#allocation7]  }
   0xf   :  { %s29_s23 = sshll.u32 %s2698_s22, 4  ;;  %s30_s23 = int_to_ptr.vmem [resolvable:$true] %s29_s23 }
  0x10   :  { %s2657_s24 = scalar_lea.vmem %s30_s23, 2048  ;;  %p2662_p6 = scmp.lt.s32.totalorder %s30_s23, %s30_s23 }
  0x11   :  { %p2658_p5 = scmp.ne.s32.totalorder %s30_s23, %s2657_s24  ;;  %p2663_p7 = scmp.lt.s32.totalorder %s2657_s24, %s2657_s24 }
  0x13   :  { %p2664_p8 = por %p2663_p7, %p2662_p6 }
  0x15   :  { %p2665_p9 = pnand %p2664_p8, %p2658_p5 }
  0x17   :  { %2668 = shalt.err (!%p2665_p9)
}
  0x18   :  { %35 = dma.hbm_to_vmem [thread:$0]  %s3758_s1, 2048, %s30_s23, [#allocation8], %s2696_s18, %s2696_s18, %s2697_s19  }
  0x19   :  { %2689 = dma.done.wait [#allocation5], 1024  }
  0x1a   :  { %2690 = vsyncadd [#allocation5], 4294966272 }
  0x1b   :  { %2691 = dma.done.wait [#allocation8], 2048  }
  0x1c   :  { %2692 = vsyncadd [#allocation8], 4294965248  ;;  %v2489_v0 = vld [vmem:[#allocation4 + $0x38] sm:$0xff]   ;;  %v2490_v1 = vld [vmem:[#allocation4 + $0x30] sm:$0xff]   ;;  %v2699_v44 = vmov 0   ;;  %s2700_s5 = smov 1  }
  0x1d   :  { %2402 = vmatprep.subr.bf16.mxu0 %v2489_v0  ;;  %v2491_v2 = vld [vmem:[#allocation4 + $0x28] sm:$0xff]   ;;  %v2492_v3 = vld [vmem:[#allocation4 + $0x20] sm:$0xff]   ;;  %v2493_v5 = vld [vmem:[#allocation4 + $0x18] sm:$0xff]   ;;  %2477 = vset.pattern.permute.xlu1 %v2699_v44 }
  0x1e   :  { %2403 = vmatpush3.bf16.msra.mxu0 %v2489_v0  ;;  %v2497_v4 = vld [vmem:[#allocation7] sm:$0xff]   ;;  %v2494_v6 = vld [vmem:[#allocation4 + $0x10] sm:$0xff]   ;;  %v2495_v7 = vld [vmem:[#allocation4 + $0x8] sm:$0xff]   ;;  %2478 = vset.pattern.permute.xlu0 %v2699_v44 }
  0x1f   :  { %2404 = vmatprep.subr.bf16.mxu0 %v2490_v1  ;;  %2418 = vmatprep.mubr.bf16.mxu0 %v2497_v4  ;;  %v2496_v8 = vld [vmem:[#allocation4] sm:$0xff]   ;;  %v2498_v9 = vld [vmem:[#allocation7 + $0x8] sm:$0xff]   ;;  %v2499_v10 = vld [vmem:[#allocation7 + $0x10] sm:$0xff]  }
  0x20   :  { %v2500_v11 = vld [vmem:[#allocation7 + $0x18] sm:$0xff]   ;;  %v2501_v12 = vld [vmem:[#allocation7 + $0x20] sm:$0xff]   ;;  %v2502_v13 = vld [vmem:[#allocation7 + $0x28] sm:$0xff]  }
  0x21   :  { %v2503_v14 = vld [vmem:[#allocation7 + $0x30] sm:$0xff]   ;;  %v2504_v15 = vld [vmem:[#allocation7 + $0x38] sm:$0xff]   ;;  %v2505_v16 = vld [vmem:[#allocation7 + $0x40] sm:$0xff]  }
  0x22   :  { %2405 = vmatpush3.bf16.msra.mxu0 %v2490_v1  ;;  %v2506_v17 = vld [vmem:[#allocation7 + $0x48] sm:$0xff]   ;;  %v2507_v18 = vld [vmem:[#allocation7 + $0x50] sm:$0xff]   ;;  %v2508_v19 = vld [vmem:[#allocation7 + $0x58] sm:$0xff]  }
  0x23   :  { %2406 = vmatprep.subr.bf16.mxu0 %v2491_v2  ;;  %v2509_v20 = vld [vmem:[#allocation7 + $0x60] sm:$0xff]   ;;  %v2510_v21 = vld [vmem:[#allocation7 + $0x68] sm:$0xff]   ;;  %v2511_v22 = vld [vmem:[#allocation7 + $0x70] sm:$0xff]  }
  0x24   :  { %v2512_v23 = vld [vmem:[#allocation7 + $0x78] sm:$0xff]  }
  0x26   :  { %2407 = vmatpush3.bf16.msra.mxu0 %v2491_v2 }
  0x27   :  { %2408 = vmatprep.subr.bf16.mxu0 %v2492_v3 }
  0x2a   :  { %2409 = vmatpush3.bf16.msra.mxu0 %v2492_v3 }
  0x2b   :  { %2410 = vmatprep.subr.bf16.mxu0 %v2493_v5 }
  0x2e   :  { %2411 = vmatpush3.bf16.msra.mxu0 %v2493_v5 }
  0x2f   :  { %2412 = vmatprep.subr.bf16.mxu0 %v2494_v6 }
  0x32   :  { %2413 = vmatpush3.bf16.msra.mxu0 %v2494_v6 }
  0x33   :  { %2414 = vmatprep.subr.bf16.mxu0 %v2495_v7 }
  0x36   :  { %2415 = vmatpush3.bf16.msra.mxu0 %v2495_v7 }
  0x37   :  { %2416 = vmatprep.subr.bf16.mxu0 %v2496_v8 }
  0x3a   :  { %2417 = vmatpush3.bf16.msra.mxu0 %v2496_v8 }
  0x3d   :  { %2419 = vmatmul.mubr.bf16.vlgmr.msra.gmra.mxu0 %v2498_v9 }
  0x3e   :  { %2422 = vmatprep.mubr.bf16.mxu0 %v2499_v10 }
  0x45   :  { %2423 = vmatmul.mubr.bf16.gmra.mxu0 %v2500_v11 }
  0x46   :  { %2426 = vmatprep.mubr.bf16.mxu0 %v2501_v12 }
  0x4d   :  { %2427 = vmatmul.mubr.bf16.gmra.mxu0 %v2502_v13 }
  0x4e   :  { %2430 = vmatprep.mubr.bf16.mxu0 %v2503_v14 }
  0x55   :  { %2431 = vmatmul.mubr.bf16.gmra.mxu0 %v2504_v15 }
  0x56   :  { %2434 = vmatprep.mubr.bf16.mxu0 %v2505_v16 }
  0x5d   :  { %2435 = vmatmul.mubr.bf16.gmra.mxu0 %v2506_v17 }
  0x5e   :  { %2438 = vmatprep.mubr.bf16.mxu0 %v2507_v18 }
  0x65   :  { %2439 = vmatmul.mubr.bf16.gmra.mxu0 %v2508_v19 }
  0x66   :  { %2442 = vmatprep.mubr.bf16.mxu0 %v2509_v20 }
  0x6d   :  { %2443 = vmatmul.mubr.bf16.gmra.mxu0 %v2510_v21 }
  0x6e   :  { %2446 = vmatprep.mubr.bf16.mxu0 %v2511_v22 }
  0x75   :  { %2447 = vmatmul.mubr.bf16.gmra.mxu0 %v2512_v23 }
  0xfd   :  { %v2737_v24 = vpop.f32.mrf.mxu0 }
  0xfe   :  { %3790 = vst [vmem:[#allocation13_spill] sm:$0xff] %v2737_v24  ;;  %405 = vadd.xlane.f32.xlu1 %v2737_v24  ;;  %v467_v27 = vmul.f32 %v2737_v24, %v2737_v24  ;;  %v3071_v24 = vld [vmem:[%s3760_s3 + $0x60] sm:$0xff] }
  0xff   :  { %v2740_v25 = vpop.f32.mrf.mxu0 }
 0x100   :  { %3791 = vst [vmem:[#allocation14_spill] sm:$0xff] %v2740_v25  ;;  %401 = vadd.xlane.f32.xlu0 %v2740_v25  ;;  %v465_v31 = vmul.f32 %v2740_v25, %v2740_v25  ;;  %v3023_v25 = vld [vmem:[%s3760_s3 + $0x40] sm:$0xff] }
 0x101   :  { %v2743_v26 = vpop.f32.mrf.mxu0 }
 0x102   :  { %3792 = vst [vmem:[#allocation15_spill] sm:$0xff] %v2743_v26  ;;  %407 = vadd.xlane.f32.xlu1 %v2743_v26  ;;  %v468_v29 = vmul.f32 %v2743_v26, %v2743_v26  ;;  %v3087_v26 = vld [vmem:[%s3760_s3 + $0x68] sm:$0xff] }
 0x103   :  { %v2748_v28 = vpop.f32.mrf.mxu0 }
 0x104   :  { %3793 = vst [vmem:[#allocation16_spill] sm:$0xff] %v2748_v28  ;;  %501 = vadd.xlane.f32.xlu0 %v467_v27  ;;  %v466_v32 = vmul.f32 %v2748_v28, %v2748_v28 }
 0x105   :  { %v2752_v30 = vpop.f32.mrf.mxu0 }
 0x106   :  { %3794 = vst [vmem:[#allocation17_spill] sm:$0xff] %v2752_v30  ;;  %503 = vadd.xlane.f32.xlu1 %v468_v29  ;;  %v471_v38 = vmul.f32 %v2752_v30, %v2752_v30 }
 0x107   :  { %v2758_v33 = vpop.f32.mrf.mxu0 }
 0x108   :  { %497 = vadd.xlane.f32.xlu0 %v465_v31  ;;  %3795 = vst [vmem:[#allocation18_spill] sm:$0xff] %v2758_v33  ;;  %v469_v41 = vmul.f32 %v2758_v33, %v2758_v33 }
 0x109   :  { %v2761_v34 = vpop.f32.mrf.mxu0 }
 0x10a   :  { %499 = vadd.xlane.f32.xlu1 %v466_v32  ;;  %3796 = vst [vmem:[#allocation19_spill] sm:$0xff] %v2761_v34  ;;  %v472_v36 = vmul.f32 %v2761_v34, %v2761_v34 }
 0x10b   :  { %v2765_v35 = vpop.f32.mrf.mxu0 }
 0x10c   :  { %403 = vadd.xlane.f32.xlu0 %v2748_v28  ;;  %3797 = vst [vmem:[#allocation20_spill] sm:$0xff] %v2765_v35  ;;  %v470_v39 = vmul.f32 %v2765_v35, %v2765_v35 }
 0x10d   :  { %v2771_v37 = vpop.f32.mrf.mxu0 }
 0x10e   :  { %415 = vadd.xlane.f32.xlu1 %v2761_v34  ;;  %v475_v47 = vmul.f32 %v2771_v37, %v2771_v37 }
 0x10f   :  { %v2777_v40 = vpop.f32.mrf.mxu0 }
 0x110   :  { %413 = vadd.xlane.f32.xlu0 %v2752_v30  ;;  %3798 = vst [vmem:[#allocation21_spill] sm:$0xff] %v2777_v40  ;;  %v473_v50 = vmul.f32 %v2777_v40, %v2777_v40  ;;  %v3175_v30 = vld [vmem:[%s3760_s3 + $0xb0] sm:$0xff] }
 0x111   :  { %v2781_v42 = vpop.f32.mrf.mxu0 }
 0x112   :  { %411 = vadd.xlane.f32.xlu1 %v2765_v35  ;;  %3799 = vst [vmem:[#allocation22_spill] sm:$0xff] %v2781_v42  ;;  %v476_v45 = vmul.f32 %v2781_v42, %v2781_v42  ;;  %v3121_v35 = vld [vmem:[%s3760_s3 + $0x80] sm:$0xff] }
 0x113   :  { %v2785_v43 = vpop.f32.mrf.mxu0 }
 0x114   :  { %409 = vadd.xlane.f32.xlu0 %v2758_v33  ;;  %3800 = vst [vmem:[#allocation23_spill] sm:$0xff] %v2785_v43  ;;  %v474_v48 = vmul.f32 %v2785_v43, %v2785_v43 }
 0x115   :  { %v2791_v46 = vpop.f32.mrf.mxu0 }
 0x116   :  { %511 = vadd.xlane.f32.xlu1 %v472_v36  ;;  %v479_v55 = vmul.f32 %v2791_v46, %v2791_v46 }
 0x117   :  { %v2797_v49 = vpop.f32.mrf.mxu0 }
 0x118   :  { %509 = vadd.xlane.f32.xlu0 %v471_v38  ;;  %3801 = vst [vmem:[#allocation24_spill] sm:$0xff] %v2797_v49  ;;  %v477_v58 = vmul.f32 %v2797_v49, %v2797_v49 }
 0x119   :  { %v2801_v51 = vpop.f32.mrf.mxu0 }
 0x11a   :  { %507 = vadd.xlane.f32.xlu1 %v470_v39  ;;  %v480_v53 = vmul.f32 %v2801_v51, %v2801_v51 }
 0x11b   :  { %v2805_v52 = vpop.f32.mrf.mxu0 }
 0x11c   :  { %505 = vadd.xlane.f32.xlu0 %v469_v41  ;;  %v478_v56 = vmul.f32 %v2805_v52, %v2805_v52 }
 0x11d   :  { %v2811_v54 = vpop.f32.mrf.mxu0 }
 0x11e   :  { %423 = vadd.xlane.f32.xlu1 %v2781_v42  ;;  %3802 = vst [vmem:[#allocation25_spill] sm:$0xff] %v2811_v54  ;;  %v483_v63 = vmul.f32 %v2811_v54, %v2811_v54 }
 0x11f   :  { %v2817_v57 = vpop.f32.mrf.mxu0 }
 0x120   :  { %421 = vadd.xlane.f32.xlu0 %v2771_v37  ;;  %3803 = vst [vmem:[#allocation26_spill] sm:$0xff] %v2817_v57  ;;  %v481_v2 = vmul.f32 %v2817_v57, %v2817_v57 }
 0x121   :  { %v2821_v59 = vpop.f32.mrf.mxu0 }
 0x122   :  { %419 = vadd.xlane.f32.xlu1 %v2785_v43  ;;  %3804 = vst [vmem:[#allocation27_spill] sm:$0xff] %v2821_v59  ;;  %v484_v61 = vmul.f32 %v2821_v59, %v2821_v59 }
 0x123   :  { %v2825_v60 = vpop.f32.mrf.mxu0 }
 0x124   :  { %417 = vadd.xlane.f32.xlu0 %v2777_v40  ;;  %3805 = vst [vmem:[#allocation28_spill] sm:$0xff] %v2825_v60  ;;  %v482_v0 = vmul.f32 %v2825_v60, %v2825_v60 }
 0x125   :  { %v2831_v62 = vpop.f32.mrf.mxu0 }
 0x126   :  { %519 = vadd.xlane.f32.xlu1 %v476_v45  ;;  %3806 = vst [vmem:[#allocation29_spill] sm:$0xff] %v2831_v62  ;;  %v487_v7 = vmul.f32 %v2831_v62, %v2831_v62 }
 0x127   :  { %v2837_v1 = vpop.f32.mrf.mxu0 }
 0x128   :  { %517 = vadd.xlane.f32.xlu0 %v475_v47  ;;  %3807 = vst [vmem:[#allocation30_spill] sm:$0xff] %v2837_v1  ;;  %v485_v10 = vmul.f32 %v2837_v1, %v2837_v1 }
 0x129   :  { %v2841_v3 = vpop.f32.mrf.mxu0 }
 0x12a   :  { %515 = vadd.xlane.f32.xlu1 %v474_v48  ;;  %3808 = vst [vmem:[#allocation31_spill] sm:$0xff] %v2841_v3  ;;  %v488_v5 = vmul.f32 %v2841_v3, %v2841_v3 }
 0x12b   :  { %v2845_v4 = vpop.f32.mrf.mxu0 }
 0x12c   :  { %513 = vadd.xlane.f32.xlu0 %v473_v50  ;;  %3809 = vst [vmem:[#allocation32_spill] sm:$0xff] %v2845_v4  ;;  %v486_v8 = vmul.f32 %v2845_v4, %v2845_v4 }
 0x12d   :  { %v2851_v6 = vpop.f32.mrf.mxu0 }
 0x12e   :  { %431 = vadd.xlane.f32.xlu1 %v2801_v51  ;;  %3810 = vst [vmem:[#allocation33_spill] sm:$0xff] %v2851_v6  ;;  %v491_v15 = vmul.f32 %v2851_v6, %v2851_v6 }
 0x12f   :  { %v2857_v9 = vpop.f32.mrf.mxu0 }
 0x130   :  { %429 = vadd.xlane.f32.xlu0 %v2791_v46  ;;  %3811 = vst [vmem:[#allocation34_spill] sm:$0xff] %v2857_v9  ;;  %v489_v18 = vmul.f32 %v2857_v9, %v2857_v9 }
 0x131   :  { %v2861_v11 = vpop.f32.mrf.mxu0 }
 0x132   :  { %427 = vadd.xlane.f32.xlu1 %v2805_v52  ;;  %3812 = vst [vmem:[#allocation35_spill] sm:$0xff] %v2861_v11  ;;  %v492_v14 = vmul.f32 %v2861_v11, %v2861_v11 }
 0x133   :  { %v2865_v12 = vpop.f32.mrf.mxu0 }
 0x134   :  { %425 = vadd.xlane.f32.xlu0 %v2797_v49  ;;  %3813 = vst [vmem:[#allocation36_spill] sm:$0xff] %v2865_v12  ;;  %v490_v17 = vmul.f32 %v2865_v12, %v2865_v12 }
 0x135   :  { %v2868_v13 = vpop.f32.mrf.mxu0 }
 0x136   :  { %527 = vadd.xlane.f32.xlu1 %v480_v53  ;;  %v495_v22 = vmul.f32 %v2868_v13, %v2868_v13 }
 0x137   :  { %v2875_v16 = vpop.f32.mrf.mxu0 }
 0x138   :  { %525 = vadd.xlane.f32.xlu0 %v479_v55  ;;  %3814 = vst [vmem:[#allocation37_spill] sm:$0xff] %v2875_v16  ;;  %v493_v27 = vmul.f32 %v2875_v16, %v2875_v16 }
 0x139   :  { %v2881_v19 = vpop.f32.mrf.mxu0 }
 0x13a   :  { %523 = vadd.xlane.f32.xlu1 %v478_v56  ;;  %v496_v21 = vmul.f32 %v2881_v19, %v2881_v19 }
 0x13b   :  { %v2884_v20 = vpop.f32.mrf.mxu0 }
 0x13c   :  { %521 = vadd.xlane.f32.xlu0 %v477_v58  ;;  %3815 = vst [vmem:[#allocation38_spill] sm:$0xff] %v2884_v20  ;;  %v494_v23 = vmul.f32 %v2884_v20, %v2884_v20 }
 0x13e   :  { %439 = vadd.xlane.f32.xlu1 %v2821_v59 }
 0x140   :  { %437 = vadd.xlane.f32.xlu0 %v2811_v54 }
 0x142   :  { %435 = vadd.xlane.f32.xlu1 %v2825_v60 }
 0x144   :  { %433 = vadd.xlane.f32.xlu0 %v2817_v57 }
 0x146   :  { %535 = vadd.xlane.f32.xlu1 %v484_v61 }
 0x148   :  { %533 = vadd.xlane.f32.xlu0 %v483_v63 }
 0x14a   :  { %531 = vadd.xlane.f32.xlu1 %v482_v0 }
 0x14c   :  { %529 = vadd.xlane.f32.xlu0 %v481_v2 }
 0x14e   :  { %447 = vadd.xlane.f32.xlu1 %v2841_v3 }
 0x150   :  { %445 = vadd.xlane.f32.xlu0 %v2831_v62 }
 0x152   :  { %443 = vadd.xlane.f32.xlu1 %v2845_v4 }
 0x154   :  { %441 = vadd.xlane.f32.xlu0 %v2837_v1 }
 0x156   :  { %543 = vadd.xlane.f32.xlu1 %v488_v5 }
 0x158   :  { %541 = vadd.xlane.f32.xlu0 %v487_v7 }
 0x15a   :  { %539 = vadd.xlane.f32.xlu1 %v486_v8 }
 0x15c   :  { %537 = vadd.xlane.f32.xlu0 %v485_v10 }
 0x15e   :  { %455 = vadd.xlane.f32.xlu1 %v2861_v11 }
 0x160   :  { %453 = vadd.xlane.f32.xlu0 %v2851_v6 }
 0x162   :  { %451 = vadd.xlane.f32.xlu1 %v2865_v12 }
 0x164   :  { %449 = vadd.xlane.f32.xlu0 %v2857_v9 }
 0x166   :  { %551 = vadd.xlane.f32.xlu1 %v492_v14 }
 0x168   :  { %549 = vadd.xlane.f32.xlu0 %v491_v15 }
 0x16a   :  { %547 = vadd.xlane.f32.xlu1 %v490_v17 }
 0x16c   :  { %545 = vadd.xlane.f32.xlu0 %v489_v18 }
 0x16e   :  { %463 = vadd.xlane.f32.xlu1 %v2881_v19 }
 0x170   :  { %461 = vadd.xlane.f32.xlu0 %v2868_v13 }
 0x172   :  { %459 = vadd.xlane.f32.xlu1 %v2884_v20 }
 0x174   :  { %457 = vadd.xlane.f32.xlu0 %v2875_v16  ;;  %v3242_v16 = vld [vmem:[%s3760_s3 + $0xc0] sm:$0xff] }
 0x176   :  { %559 = vadd.xlane.f32.xlu1 %v496_v21 }
 0x178   :  { %557 = vadd.xlane.f32.xlu0 %v495_v22 }
 0x17a   :  { %555 = vadd.xlane.f32.xlu1 %v494_v23 }
 0x17c   :  { %553 = vadd.xlane.f32.xlu0 %v493_v27 }
 0x187   :  { %v406_v29 = vpop.xlane.xlu1 %405 }
 0x188   :  { %v563_v32 = vmul.f32 0.01, %v406_v29 }
 0x189   :  { %v402_v31 = vpop.xlane.xlu0 %401 }
 0x18a   :  { %v627_v41 = vmul.f32 %v563_v32, %v563_v32  ;;  %v2899_v44 = vmul.f32 0.01, %v402_v31 }
 0x18b   :  { %v408_v36 = vpop.xlane.xlu1 %407 }
 0x18c   :  { %v2897_v38 = vmul.f32 0.01, %v408_v36  ;;  %v625_v56 = vmul.f32 %v2899_v44, %v2899_v44 }
 0x18d   :  { %v502_v39 = vpop.xlane.xlu0 %501 }
 0x18e   :  { %v595_v45 = vmul.f32 0.01, %v502_v39  ;;  %v628_v48 = vmul.f32 %v2897_v38, %v2897_v38  ;;  %v755_v39 = vld [vmem:[%s3760_s3 + $0x10] sm:$0xff] }
 0x18f   :  { %v504_v47 = vpop.xlane.xlu1 %503 }
 0x190   :  { %v659_v50 = vsub.f32 %v595_v45, %v627_v41  ;;  %v596_v53 = vmul.f32 0.01, %v504_v47 }
 0x191   :  { %v498_v55 = vpop.xlane.xlu0 %497 }
 0x192   :  { %v691_v58 = vadd.f32 1e-05, %v659_v50  ;;  %v660_v61 = vsub.f32 %v596_v53, %v628_v48  ;;  %v593_v63 = vmul.f32 0.01, %v498_v55 }
 0x193   :  { %v500_v0 = vpop.xlane.xlu1 %499 }
 0x194   :  { %2561 = vrsqrt.f32 %v691_v58  ;;  %v692_v2 = vadd.f32 1e-05, %v660_v61  ;;  %v657_v5 = vsub.f32 %v593_v63, %v625_v56  ;;  %v594_v15 = vmul.f32 0.01, %v500_v0 }
 0x195   :  { %v404_v7 = vpop.xlane.xlu0 %403 }
 0x196   :  { %2563 = vrsqrt.f32 %v692_v2  ;;  %v689_v8 = vadd.f32 1e-05, %v657_v5  ;;  %v2905_v10 = vmul.f32 0.01, %v404_v7  ;;  %v2927_v2 = vld [vmem:[%s3760_s3 + $0x18] sm:$0xff] }
 0x197   :  { %v416_v14 = vpop.xlane.xlu1 %415 }
 0x198   :  { %2565 = vrsqrt.f32 %v689_v8  ;;  %v626_v17 = vmul.f32 %v2905_v10, %v2905_v10  ;;  %v2909_v27 = vmul.f32 0.01, %v416_v14  ;;  %v753_v8 = vld [vmem:[%s3760_s3] sm:$0xff] }
 0x199   :  { %v414_v18 = vpop.xlane.xlu0 %413 }
 0x19a   :  { %v658_v21 = vsub.f32 %v594_v15, %v626_v17  ;;  %v2911_v31 = vmul.f32 0.01, %v414_v18  ;;  %v632_v47 = vmul.f32 %v2909_v27, %v2909_v27 }
 0x19b   :  { %v412_v22 = vpop.xlane.xlu1 %411 }
 0x19c   :  { %v690_v23 = vadd.f32 1e-05, %v658_v21  ;;  %v2918_v48 = vmul.f32 0.01, %v412_v22  ;;  %v631_v55 = vmul.f32 %v2911_v31, %v2911_v31 }
 0x19d   :  { %v410_v29 = vpop.xlane.xlu0 %409 }
 0x19e   :  { %2567 = vrsqrt.f32 %v690_v23  ;;  %v2920_v50 = vmul.f32 0.01, %v410_v29  ;;  %v630_v15 = vmul.f32 %v2918_v48, %v2918_v48 }
 0x19f   :  { %v512_v36 = vpop.xlane.xlu1 %511 }
 0x1a0   :  { %v600_v41 = vmul.f32 0.01, %v512_v36  ;;  %v629_v17 = vmul.f32 %v2920_v50, %v2920_v50 }
 0x1a1   :  { %v2562_v45 = vpop.eup %2561  ;;  %v510_v53 = vpop.xlane.xlu0 %509 }
 0x1a2   :  { %v599_v56 = vmul.f32 0.01, %v510_v53  ;;  %v787_v58 = vmul.f32 %v2562_v45, %v755_v39  ;;  %v664_v63 = vsub.f32 %v600_v41, %v632_v47 }
 0x1a3   :  { %v2564_v61 = vpop.eup %2563  ;;  %v508_v0 = vpop.xlane.xlu1 %507 }
 0x1a4   :  { %v663_v5 = vsub.f32 %v599_v56, %v631_v55  ;;  %v598_v7 = vmul.f32 0.01, %v508_v0  ;;  %1021 = vperm.xlu1 %2477, %v787_v58   ;;  %v819_v23 = vmul.f32 %v787_v58, %v563_v32  ;;  %v788_v29 = vmul.f32 %v2564_v61, %v2927_v2  ;;  %v2942_v32 = vld [vmem:[%s3760_s3 + $0x8] sm:$0xff] }
 0x1a5   :  { %v2566_v14 = vpop.eup %2565  ;;  %v506_v18 = vpop.xlane.xlu0 %505  ;;  %v696_v36 = vadd.f32 1e-05, %v664_v63 }
 0x1a6   :  { %v695_v21 = vadd.f32 1e-05, %v663_v5  ;;  %v597_v22 = vmul.f32 0.01, %v506_v18  ;;  %v662_v39 = vsub.f32 %v598_v7, %v630_v15  ;;  %v785_v45 = vmul.f32 %v2566_v14, %v753_v8 }
 0x1a7   :  { %v424_v41 = vpop.xlane.xlu1 %423  ;;  %v820_v56 = vmul.f32 %v788_v29, %v2897_v38 }
 0x1a8   :  { %2569 = vrsqrt.f32 %v695_v21  ;;  %v661_v47 = vsub.f32 %v597_v22, %v629_v17  ;;  %885 = vrot.lane.b32.xlu1 %v819_v23, %s2700_s5  ;;  %1011 = vperm.xlu0 %2478, %v785_v45   ;;  %v694_v58 = vadd.f32 1e-05, %v662_v39  ;;  %v817_v63 = vmul.f32 %v785_v45, %v2899_v44 }
 0x1a9   :  { %v422_v53 = vpop.xlane.xlu0 %421  ;;  %2571 = vrsqrt.f32 %v696_v36  ;;  %v2946_v5 = vmul.f32 0.01, %v424_v41 }
 0x1aa   :  { %v693_v55 = vadd.f32 1e-05, %v661_v47  ;;  %v2950_v8 = vmul.f32 0.01, %v422_v53  ;;  %v2965_v53 = vld [vmem:[%s3760_s3 + $0x30] sm:$0xff] }
 0x1ab   :  { %v2568_v0 = vpop.eup %2567  ;;  %v420_v61 = vpop.xlane.xlu1 %419  ;;  %v636_v17 = vmul.f32 %v2946_v5, %v2946_v5 }
 0x1ac   :  { %2573 = vrsqrt.f32 %v693_v55  ;;  %887 = vrot.lane.b32.xlu1 %v820_v56, %s2700_s5  ;;  %881 = vrot.lane.b32.xlu0 %v817_v63, %s2700_s5  ;;  %v786_v38 = vmul.f32 %v2568_v0, %v2942_v32  ;;  %v2954_v44 = vmul.f32 0.01, %v420_v61  ;;  %v635_v22 = vmul.f32 %v2950_v8, %v2950_v8 }
 0x1ad   :  { %v418_v7 = vpop.xlane.xlu0 %417  ;;  %2575 = vrsqrt.f32 %v694_v58 }
 0x1ae   :  { %v818_v21 = vmul.f32 %v786_v38, %v2905_v10  ;;  %v2959_v23 = vmul.f32 0.01, %v418_v7  ;;  %v634_v10 = vmul.f32 %v2954_v44, %v2954_v44 }
 0x1af   :  { %v520_v14 = vpop.xlane.xlu1 %519 }
 0x1b0   :  { %v604_v15 = vmul.f32 0.01, %v520_v14  ;;  %1016 = vperm.xlu1 %2477, %v786_v38   ;;  %1026 = vperm.xlu0 %2478, %v788_v29   ;;  %v633_v56 = vmul.f32 %v2959_v23, %v2959_v23 }
 0x1b1   :  { %v518_v18 = vpop.xlane.xlu0 %517 }
 0x1b2   :  { %v603_v36 = vmul.f32 0.01, %v518_v18  ;;  %v668_v39 = vsub.f32 %v604_v15, %v636_v17  ;;  %v2975_v17 = vld [vmem:[%s3760_s3 + $0x20] sm:$0xff]  ;;  %v2980_v18 = vld [vmem:[%s3760_s3 + $0x38] sm:$0xff] }
 0x1b3   :  { %v516_v41 = vpop.xlane.xlu1 %515 }
 0x1b4   :  { %v667_v45 = vsub.f32 %v603_v36, %v635_v22  ;;  %v602_v47 = vmul.f32 0.01, %v516_v41  ;;  %883 = vrot.lane.b32.xlu1 %v818_v21, %s2700_s5  ;;  %v700_v61 = vadd.f32 1e-05, %v668_v39 }
 0x1b5   :  { %v2570_v29 = vpop.eup %2569  ;;  %v514_v55 = vpop.xlane.xlu0 %513 }
 0x1b6   :  { %v699_v0 = vadd.f32 1e-05, %v667_v45  ;;  %v601_v58 = vmul.f32 0.01, %v514_v55  ;;  %v666_v63 = vsub.f32 %v602_v47, %v634_v10  ;;  %v791_v38 = vmul.f32 %v2570_v29, %v2965_v53  ;;  %v2572_v14 = vpop.eup %2571  ;;  %v2989_v55 = vld [vmem:[%s3760_s3 + $0x28] sm:$0xff] }
 0x1b7   :  { %v432_v7 = vpop.xlane.xlu1 %431  ;;  %v792_v29 = vmul.f32 %v2572_v14, %v2980_v18 }
 0x1b8   :  { %2577 = vrsqrt.f32 %v699_v0  ;;  %v665_v15 = vsub.f32 %v601_v58, %v633_v56  ;;  %1041 = vperm.xlu1 %2477, %v791_v38   ;;  %v823_v36 = vmul.f32 %v791_v38, %v2911_v31  ;;  %v698_v41 = vadd.f32 1e-05, %v666_v63 }
 0x1b9   :  { %v2574_v21 = vpop.eup %2573  ;;  %v430_v22 = vpop.xlane.xlu0 %429  ;;  %2579 = vrsqrt.f32 %v700_v61  ;;  %v2991_v56 = vmul.f32 0.01, %v432_v7  ;;  %v824_v63 = vmul.f32 %v792_v29, %v2909_v27 }
 0x1ba   :  { %v697_v39 = vadd.f32 1e-05, %v665_v15  ;;  %893 = vrot.lane.b32.xlu0 %v823_v36, %s2700_s5  ;;  %v789_v47 = vmul.f32 %v2574_v21, %v2975_v17  ;;  %v2576_v10 = vpop.eup %2575  ;;  %v2994_v58 = vmul.f32 0.01, %v430_v22 }
 0x1bb   :  { %v428_v45 = vpop.xlane.xlu1 %427  ;;  %v790_v38 = vmul.f32 %v2576_v10, %v2989_v55  ;;  %v640_v15 = vmul.f32 %v2991_v56, %v2991_v56 }
 0x1bc   :  { %2581 = vrsqrt.f32 %v697_v39  ;;  %1031 = vperm.xlu1 %2477, %v789_v47   ;;  %v821_v0 = vmul.f32 %v789_v47, %v2920_v50  ;;  %v3001_v7 = vmul.f32 0.01, %v428_v45  ;;  %v639_v50 = vmul.f32 %v2994_v58, %v2994_v58  ;;  %v3012_v45 = vld [vmem:[%s3760_s3 + $0x50] sm:$0xff] }
 0x1bd   :  { %v426_v31 = vpop.xlane.xlu0 %425  ;;  %2583 = vrsqrt.f32 %v698_v41  ;;  %v822_v41 = vmul.f32 %v790_v38, %v2918_v48 }
 0x1be   :  { %889 = vrot.lane.b32.xlu0 %v821_v0, %s2700_s5  ;;  %v3006_v22 = vmul.f32 0.01, %v426_v31 }
 0x1bf   :  { %v528_v61 = vpop.xlane.xlu1 %527 }
 0x1c0   :  { %v608_v14 = vmul.f32 0.01, %v528_v61  ;;  %895 = vrot.lane.b32.xlu1 %v824_v63, %s2700_s5  ;;  %v638_v61 = vmul.f32 %v3001_v7, %v3001_v7 }
 0x1c1   :  { %v526_v21 = vpop.xlane.xlu0 %525 }
 0x1c2   :  { %v607_v36 = vmul.f32 0.01, %v526_v21  ;;  %v672_v39 = vsub.f32 %v608_v14, %v640_v15  ;;  %1046 = vperm.xlu0 %2478, %v792_v29   ;;  %v637_v29 = vmul.f32 %v3006_v22, %v3006_v22 }
 0x1c3   :  { %v524_v27 = vpop.xlane.xlu1 %523 }
 0x1c4   :  { %v671_v47 = vsub.f32 %v607_v36, %v639_v50  ;;  %v606_v10 = vmul.f32 0.01, %v524_v27  ;;  %891 = vrot.lane.b32.xlu1 %v822_v41, %s2700_s5  ;;  %v704_v48 = vadd.f32 1e-05, %v672_v39  ;;  %v3028_v41 = vld [vmem:[%s3760_s3 + $0x58] sm:$0xff] }
 0x1c5   :  { %v2578_v0 = vpop.eup %2577  ;;  %v522_v31 = vpop.xlane.xlu0 %521 }
 0x1c6   :  { %v703_v63 = vadd.f32 1e-05, %v671_v47  ;;  %v605_v14 = vmul.f32 0.01, %v522_v31  ;;  %v670_v15 = vsub.f32 %v606_v10, %v638_v61  ;;  %1036 = vperm.xlu0 %2478, %v790_v38   ;;  %v795_v50 = vmul.f32 %v2578_v0, %v3012_v45  ;;  %v2580_v36 = vpop.eup %2579 }
 0x1c7   :  { %v440_v21 = vpop.xlane.xlu1 %439 }
 0x1c8   :  { %2585 = vrsqrt.f32 %v703_v63  ;;  %v669_v27 = vsub.f32 %v605_v14, %v637_v29  ;;  %1061 = vperm.xlu1 %2477, %v795_v50   ;;  %v827_v38 = vmul.f32 %v795_v50, %v2950_v8  ;;  %v702_v0 = vadd.f32 1e-05, %v670_v15  ;;  %v3037_v14 = vld [vmem:[%s3760_s3 + $0x48] sm:$0xff] }
 0x1c9   :  { %v2582_v47 = vpop.eup %2581  ;;  %v438_v39 = vpop.xlane.xlu0 %437  ;;  %2587 = vrsqrt.f32 %v704_v48  ;;  %v796_v29 = vmul.f32 %v2580_v36, %v3028_v41  ;;  %v3039_v28 = vmul.f32 0.01, %v440_v21 }
 0x1ca   :  { %v701_v10 = vadd.f32 1e-05, %v669_v27  ;;  %901 = vrot.lane.b32.xlu0 %v827_v38, %s2700_s5  ;;  %v793_v31 = vmul.f32 %v2582_v47, %v3023_v25  ;;  %v2584_v63 = vpop.eup %2583  ;;  %v3042_v15 = vmul.f32 0.01, %v438_v39 }
 0x1cb   :  { %v436_v61 = vpop.xlane.xlu1 %435  ;;  %v828_v36 = vmul.f32 %v796_v29, %v2946_v5  ;;  %v794_v27 = vmul.f32 %v2584_v63, %v3037_v14  ;;  %v644_v38 = vmul.f32 %v3039_v28, %v3039_v28 }
 0x1cc   :  { %2589 = vrsqrt.f32 %v701_v10  ;;  %1051 = vperm.xlu1 %2477, %v793_v31   ;;  %v825_v48 = vmul.f32 %v793_v31, %v2959_v23  ;;  %v3049_v21 = vmul.f32 0.01, %v436_v61  ;;  %v643_v23 = vmul.f32 %v3042_v15, %v3042_v15  ;;  %v3060_v61 = vld [vmem:[%s3760_s3 + $0x70] sm:$0xff] }
 0x1cd   :  { %v434_v8 = vpop.xlane.xlu0 %433  ;;  %2591 = vrsqrt.f32 %v702_v0  ;;  %v826_v63 = vmul.f32 %v794_v27, %v2954_v44 }
 0x1ce   :  { %897 = vrot.lane.b32.xlu0 %v825_v48, %s2700_s5  ;;  %v3054_v39 = vmul.f32 0.01, %v434_v8  ;;  %v642_v57 = vmul.f32 %v3049_v21, %v3049_v21 }
 0x1cf   :  { %v536_v50 = vpop.xlane.xlu1 %535 }
 0x1d0   :  { %v612_v47 = vmul.f32 0.01, %v536_v50  ;;  %903 = vrot.lane.b32.xlu1 %v828_v36, %s2700_s5 }
 0x1d1   :  { %v534_v10 = vpop.xlane.xlu0 %533 }
 0x1d2   :  { %v611_v0 = vmul.f32 0.01, %v534_v10  ;;  %v676_v31 = vsub.f32 %v612_v47, %v644_v38  ;;  %1066 = vperm.xlu0 %2478, %v796_v29   ;;  %v641_v29 = vmul.f32 %v3054_v39, %v3054_v39 }
 0x1d3   :  { %v532_v5 = vpop.xlane.xlu1 %531 }
 0x1d4   :  { %v675_v48 = vsub.f32 %v611_v0, %v643_v23  ;;  %v610_v50 = vmul.f32 0.01, %v532_v5  ;;  %899 = vrot.lane.b32.xlu1 %v826_v63, %s2700_s5  ;;  %v708_v44 = vadd.f32 1e-05, %v676_v31  ;;  %v3076_v63 = vld [vmem:[%s3760_s3 + $0x78] sm:$0xff] }
 0x1d5   :  { %v2586_v36 = vpop.eup %2585  ;;  %v530_v8 = vpop.xlane.xlu0 %529 }
 0x1d6   :  { %v707_v47 = vadd.f32 1e-05, %v675_v48  ;;  %v609_v38 = vmul.f32 0.01, %v530_v8  ;;  %v674_v10 = vsub.f32 %v610_v50, %v642_v57  ;;  %1056 = vperm.xlu0 %2478, %v794_v27   ;;  %v799_v0 = vmul.f32 %v2586_v36, %v3060_v61  ;;  %v2588_v5 = vpop.eup %2587 }
 0x1d7   :  { %v448_v23 = vpop.xlane.xlu1 %447 }
 0x1d8   :  { %2593 = vrsqrt.f32 %v707_v47  ;;  %v673_v60 = vsub.f32 %v609_v38, %v641_v29  ;;  %1081 = vperm.xlu1 %2477, %v799_v0   ;;  %v831_v27 = vmul.f32 %v799_v0, %v2994_v58  ;;  %v706_v50 = vadd.f32 1e-05, %v674_v10 }
 0x1d9   :  { %v2590_v48 = vpop.eup %2589  ;;  %v446_v57 = vpop.xlane.xlu0 %445  ;;  %2595 = vrsqrt.f32 %v708_v44  ;;  %v800_v29 = vmul.f32 %v2588_v5, %v3076_v63  ;;  %v3082_v38 = vmul.f32 0.01, %v448_v23 }
 0x1da   :  { %v705_v31 = vadd.f32 1e-05, %v673_v60  ;;  %909 = vrot.lane.b32.xlu0 %v831_v27, %s2700_s5  ;;  %v797_v8 = vmul.f32 %v2590_v48, %v3071_v24  ;;  %v2592_v47 = vpop.eup %2591  ;;  %v3090_v44 = vmul.f32 0.01, %v446_v57 }
 0x1db   :  { %v444_v36 = vpop.xlane.xlu1 %443  ;;  %v832_v0 = vmul.f32 %v800_v29, %v2991_v56  ;;  %v798_v23 = vmul.f32 %v2592_v47, %v3087_v26  ;;  %v648_v5 = vmul.f32 %v3082_v38, %v3082_v38 }
 0x1dc   :  { %2597 = vrsqrt.f32 %v705_v31  ;;  %1071 = vperm.xlu1 %2477, %v797_v8   ;;  %v829_v58 = vmul.f32 %v797_v8, %v3006_v22  ;;  %v3097_v48 = vmul.f32 0.01, %v444_v36  ;;  %v647_v57 = vmul.f32 %v3090_v44, %v3090_v44 }
 0x1dd   :  { %v442_v60 = vpop.xlane.xlu0 %441  ;;  %2599 = vrsqrt.f32 %v706_v50  ;;  %v830_v47 = vmul.f32 %v798_v23, %v3001_v7 }
 0x1de   :  { %905 = vrot.lane.b32.xlu0 %v829_v58, %s2700_s5  ;;  %v3099_v31 = vmul.f32 0.01, %v442_v60  ;;  %v646_v58 = vmul.f32 %v3097_v48, %v3097_v48  ;;  %v3110_v60 = vld [vmem:[%s3760_s3 + $0x90] sm:$0xff] }
 0x1df   :  { %v544_v10 = vpop.xlane.xlu1 %543 }
 0x1e0   :  { %v616_v27 = vmul.f32 0.01, %v544_v10  ;;  %911 = vrot.lane.b32.xlu1 %v832_v0, %s2700_s5 }
 0x1e1   :  { %v542_v22 = vpop.xlane.xlu0 %541 }
 0x1e2   :  { %v680_v50 = vsub.f32 %v616_v27, %v648_v5  ;;  %v615_v8 = vmul.f32 0.01, %v542_v22  ;;  %1086 = vperm.xlu0 %2478, %v800_v29   ;;  %v645_v5 = vmul.f32 %v3099_v31, %v3099_v31 }
 0x1e3   :  { %v540_v56 = vpop.xlane.xlu1 %539 }
 0x1e4   :  { %v712_v36 = vadd.f32 1e-05, %v680_v50  ;;  %v679_v59 = vsub.f32 %v615_v8, %v647_v57  ;;  %v614_v10 = vmul.f32 0.01, %v540_v56  ;;  %907 = vrot.lane.b32.xlu1 %v830_v47, %s2700_s5 }
 0x1e5   :  { %v2594_v0 = vpop.eup %2593  ;;  %v538_v29 = vpop.xlane.xlu0 %537 }
 0x1e6   :  { %2601 = vrsqrt.f32 %v712_v36  ;;  %v711_v7 = vadd.f32 1e-05, %v679_v59  ;;  %v678_v27 = vsub.f32 %v614_v10, %v646_v58  ;;  %v613_v22 = vmul.f32 0.01, %v538_v29  ;;  %1076 = vperm.xlu0 %2478, %v798_v23   ;;  %v2596_v8 = vpop.eup %2595  ;;  %v3126_v59 = vld [vmem:[%s3760_s3 + $0x98] sm:$0xff] }
 0x1e7   :  { %v456_v50 = vpop.xlane.xlu1 %455  ;;  %v3116_v57 = vmul.f32 %v2594_v0, %v3110_v60 }
 0x1e8   :  { %2603 = vrsqrt.f32 %v711_v7  ;;  %v710_v56 = vadd.f32 1e-05, %v678_v27  ;;  %v677_v54 = vsub.f32 %v613_v22, %v645_v5  ;;  %v3133_v5 = vmul.f32 %v2596_v8, %v3126_v59  ;;  %v3140_v27 = vld [vmem:[%s3760_s3 + $0x88] sm:$0xff] }
 0x1e9   :  { %v2598_v47 = vpop.eup %2597  ;;  %v454_v23 = vpop.xlane.xlu0 %453  ;;  %v835_v58 = vmul.f32 %v3116_v57, %v3042_v15  ;;  %v3135_v7 = vmul.f32 0.01, %v456_v50 }
 0x1ea   :  { %2605 = vrsqrt.f32 %v710_v56  ;;  %v709_v36 = vadd.f32 1e-05, %v677_v54  ;;  %v801_v0 = vmul.f32 %v2598_v47, %v3121_v35  ;;  %v2600_v29 = vpop.eup %2599  ;;  %v3143_v22 = vmul.f32 0.01, %v454_v23  ;;  %v3161_v23 = vld [vmem:[%s3760_s3 + $0xb8] sm:$0xff] }
 0x1eb   :  { %917 = vrot.lane.b32.xlu0 %v835_v58, %s2700_s5  ;;  %v452_v10 = vpop.xlane.xlu1 %451  ;;  %v836_v50 = vmul.f32 %v3133_v5, %v3039_v28  ;;  %v3151_v47 = vmul.f32 %v2600_v29, %v3140_v27  ;;  %v652_v58 = vmul.f32 %v3135_v7, %v3135_v7  ;;  %3816 = vst [vmem:[#allocation39_spill] sm:$0xff] %v3161_v23 }
 0x1ec   :  { %2607 = vrsqrt.f32 %v709_v36  ;;  %1091 = vperm.xlu1 %2477, %v801_v0   ;;  %v833_v54 = vmul.f32 %v801_v0, %v3054_v39  ;;  %v3145_v56 = vmul.f32 0.01, %v452_v10  ;;  %v651_v28 = vmul.f32 %v3143_v22, %v3143_v22 }
 0x1ed   :  { %v450_v15 = vpop.xlane.xlu0 %449 }
 0x1ee   :  { %v3155_v33 = vmul.f32 0.01, %v450_v15  ;;  %v834_v15 = vmul.f32 %v3151_v47, %v3049_v21 }
 0x1ef   :  { %913 = vrot.lane.b32.xlu0 %v833_v54, %s2700_s5  ;;  %v552_v8 = vpop.xlane.xlu1 %551  ;;  %v650_v54 = vmul.f32 %v3145_v56, %v3145_v56 }
 0x1f0   :  { %v620_v36 = vmul.f32 0.01, %v552_v8  ;;  %919 = vrot.lane.b32.xlu1 %v836_v50, %s2700_s5 }
 0x1f1   :  { %v550_v39 = vpop.xlane.xlu0 %549 }
 0x1f2   :  { %v684_v10 = vsub.f32 %v620_v36, %v652_v58  ;;  %v619_v0 = vmul.f32 0.01, %v550_v39  ;;  %v649_v36 = vmul.f32 %v3155_v33, %v3155_v33 }
 0x1f3   :  { %v2602_v29 = vpop.eup %2601  ;;  %v548_v8 = vpop.xlane.xlu1 %547 }
 0x1f4   :  { %v716_v50 = vadd.f32 1e-05, %v684_v10  ;;  %v683_v4 = vsub.f32 %v619_v0, %v651_v28  ;;  %v618_v34 = vmul.f32 0.01, %v548_v8  ;;  %v3170_v1 = vmul.f32 %v2602_v29, %v3161_v23  ;;  %915 = vrot.lane.b32.xlu1 %v834_v15, %s2700_s5  ;;  %v3183_v0 = vld [vmem:[%s3760_s3 + $0xa8] sm:$0xff] }
 0x1f5   :  { %v2604_v58 = vpop.eup %2603  ;;  %v546_v39 = vpop.xlane.xlu0 %545 }
 0x1f6   :  { %2609 = vrsqrt.f32 %v716_v50  ;;  %v715_v21 = vadd.f32 1e-05, %v683_v4  ;;  %v682_v10 = vsub.f32 %v618_v34, %v650_v54  ;;  %v617_v28 = vmul.f32 0.01, %v546_v39  ;;  %v3193_v34 = vld [vmem:[%s3760_s3 + $0xa0] sm:$0xff] }
 0x1f7   :  { %v2606_v29 = vpop.eup %2605  ;;  %v464_v8 = vpop.xlane.xlu1 %463  ;;  %v840_v62 = vmul.f32 %v3170_v1, %v3082_v38  ;;  %v3188_v3 = vmul.f32 %v2604_v58, %v3175_v30 }
 0x1f8   :  { %2611 = vrsqrt.f32 %v715_v21  ;;  %v714_v15 = vadd.f32 1e-05, %v682_v10  ;;  %v681_v40 = vsub.f32 %v617_v28, %v649_v36  ;;  %v3199_v38 = vmul.f32 %v2606_v29, %v3183_v0 }
 0x1f9   :  { %v2608_v4 = vpop.eup %2607  ;;  %927 = vrot.lane.b32.xlu1 %v840_v62, %s2700_s5  ;;  %v462_v54 = vpop.xlane.xlu0 %461  ;;  %v839_v50 = vmul.f32 %v3188_v3, %v3090_v44  ;;  %v3201_v39 = vmul.f32 0.01, %v464_v8 }
 0x1fa   :  { %2613 = vrsqrt.f32 %v714_v15  ;;  %v713_v58 = vadd.f32 1e-05, %v681_v40  ;;  %v838_v21 = vmul.f32 %v3199_v38, %v3097_v48  ;;  %v805_v10 = vmul.f32 %v2608_v4, %v3193_v34  ;;  %v3217_v4 = vld [vmem:[%s3760_s3 + $0xd8] sm:$0xff] }
 0x1fb   :  { %925 = vrot.lane.b32.xlu0 %v839_v50, %s2700_s5  ;;  %v460_v36 = vpop.xlane.xlu1 %459  ;;  %v591_v62 = vmul.f32 0.01, %v462_v54  ;;  %v656_v40 = vmul.f32 %v3201_v39, %v3201_v39 }
 0x1fc   :  { %2615 = vrsqrt.f32 %v713_v58  ;;  %v837_v28 = vmul.f32 %v805_v10, %v3099_v31  ;;  %v3211_v29 = vmul.f32 0.01, %v460_v36 }
 0x1fd   :  { %923 = vrot.lane.b32.xlu1 %v838_v21, %s2700_s5  ;;  %v458_v44 = vpop.xlane.xlu0 %457  ;;  %v655_v15 = vmul.f32 %v591_v62, %v591_v62 }
 0x1fe   :  { %v589_v50 = vmul.f32 0.01, %v458_v44  ;;  %v654_v31 = vmul.f32 %v3211_v29, %v3211_v29  ;;  %v3227_v44 = vld [vmem:[%s3760_s3 + $0xd0] sm:$0xff] }
 0x1ff   :  { %921 = vrot.lane.b32.xlu0 %v837_v28, %s2700_s5  ;;  %v560_v8 = vpop.xlane.xlu1 %559 }
 0x200   :  { %v624_v48 = vmul.f32 0.01, %v560_v8  ;;  %v653_v12 = vmul.f32 %v589_v50, %v589_v50 }
 0x201   :  { %v558_v43 = vpop.xlane.xlu0 %557 }
 0x202   :  { %v623_v54 = vmul.f32 0.01, %v558_v43  ;;  %v688_v21 = vsub.f32 %v624_v48, %v656_v40  ;;  %v3232_v43 = vld [vmem:[%s3760_s3 + $0xc8] sm:$0xff] }
 0x203   :  { %v2610_v58 = vpop.eup %2609  ;;  %v556_v36 = vpop.xlane.xlu1 %555 }
 0x204   :  { %v687_v9 = vsub.f32 %v623_v54, %v655_v15  ;;  %v622_v28 = vmul.f32 0.01, %v556_v36  ;;  %v3222_v42 = vmul.f32 %v2610_v58, %v3217_v4  ;;  %v720_v15 = vadd.f32 1e-05, %v688_v21 }
 0x205   :  { %v2612_v8 = vpop.eup %2611  ;;  %v554_v6 = vpop.xlane.xlu0 %553 }
 0x206   :  { %v719_v40 = vadd.f32 1e-05, %v687_v9  ;;  %v621_v48 = vmul.f32 0.01, %v554_v6  ;;  %v686_v54 = vsub.f32 %v622_v28, %v654_v31  ;;  %v844_v58 = vmul.f32 %v3222_v42, %v3135_v7 }
 0x207   :  { %v2614_v20 = vpop.eup %2613  ;;  %v3237_v36 = vmul.f32 %v2612_v8, %v3227_v44 }
 0x208   :  { %2617 = vrsqrt.f32 %v719_v40  ;;  %v685_v11 = vsub.f32 %v621_v48, %v653_v12  ;;  %v810_v49 = vmul.f32 %v2614_v20, %v3232_v43  ;;  %935 = vrot.lane.b32.xlu1 %v844_v58, %s2700_s5  ;;  %v718_v28 = vadd.f32 1e-05, %v686_v54 }
 0x209   :  { %v2616_v9 = vpop.eup %2615  ;;  %v843_v6 = vmul.f32 %v3237_v36, %v3143_v22  ;;  %2619 = vrsqrt.f32 %v720_v15 }
 0x20a   :  { %v717_v31 = vadd.f32 1e-05, %v685_v11  ;;  %v842_v7 = vmul.f32 %v810_v49, %v3145_v56  ;;  %v809_v21 = vmul.f32 %v2616_v9, %v3242_v16  ;;  %v3258_v11 = vld [vmem:[%s3760_s3 + $0xf0] sm:$0xff] }
 0x20b   :  { %933 = vrot.lane.b32.xlu0 %v843_v6, %s2700_s5 }
 0x20c   :  { %2621 = vrsqrt.f32 %v717_v31  ;;  %v841_v12 = vmul.f32 %v809_v21, %v3155_v33  ;;  %931 = vrot.lane.b32.xlu1 %v842_v7, %s2700_s5  ;;  %v3264_v33 = vld [vmem:[%s3760_s3 + $0xe0] sm:$0xff] }
 0x20d   :  { %2623 = vrsqrt.f32 %v718_v28 }
 0x20f   :  { %929 = vrot.lane.b32.xlu0 %v841_v12, %s2700_s5  ;;  %v2701_v12 = vmov 1  }
 0x210   :  { %1101 = vperm.xlu1 %2477, %v3116_v57   ;;  %v3269_v57 = vld [vmem:[%s3760_s3 + $0xf8] sm:$0xff] }
 0x214   :  { %1111 = vperm.xlu1 %2477, %v805_v10  }
 0x215   :  { %v2618_v20 = vpop.eup %2617 }
 0x216   :  { %v815_v22 = vmul.f32 %v2618_v20, %v3258_v11  ;;  %v2620_v56 = vpop.eup %2619 }
 0x217   :  { %v816_v48 = vmul.f32 %v2620_v56, %v3269_v57 }
 0x218   :  { %v847_v8 = vmul.f32 %v815_v22, %v591_v62  ;;  %1121 = vperm.xlu1 %2477, %v3188_v3   ;;  %v3278_v62 = vld [vmem:[%s3760_s3 + $0xe8] sm:$0xff] }
 0x219   :  { %v2622_v40 = vpop.eup %2621  ;;  %v848_v3 = vmul.f32 %v816_v48, %v3201_v39 }
 0x21a   :  { %941 = vrot.lane.b32.xlu0 %v847_v8, %s2700_s5  ;;  %v813_v10 = vmul.f32 %v2622_v40, %v3264_v33  ;;  %v2624_v15 = vpop.eup %2623 }
 0x21b   :  { %v814_v9 = vmul.f32 %v2624_v15, %v3278_v62 }
 0x21c   :  { %v845_v54 = vmul.f32 %v813_v10, %v589_v50  ;;  %1131 = vperm.xlu1 %2477, %v809_v21  }
 0x21d   :  { %v846_v50 = vmul.f32 %v814_v9, %v3211_v29 }
 0x21e   :  { %937 = vrot.lane.b32.xlu0 %v845_v54, %s2700_s5 }
 0x21f   :  { %v3281_v58 = vpop.permute.xlu1 %1021 }
 0x220   :  { %3817 = vst [vmem:[#allocation40_spill] sm:$0xff] %v3281_v58  ;;  %943 = vrot.lane.b32.xlu1 %v848_v3, %s2700_s5 }
 0x222   :  { %1096 = vperm.xlu0 %2478, %v3151_v47  }
 0x223   :  { %v3287_v6 = vpop.permute.xlu1 %885  ;;  %v3290_v31 = vpop.permute.xlu0 %1011 }
 0x224   :  { %3818 = vst [vmem:[#allocation41_spill] sm:$0xff] %v3290_v31  ;;  %939 = vrot.lane.b32.xlu1 %v846_v50, %s2700_s5 }
 0x226   :  { %1106 = vperm.xlu0 %2478, %v3133_v5  }
 0x227   :  { %v3294_v7 = vpop.permute.xlu1 %887  ;;  %v3296_v21 = vpop.permute.xlu0 %881 }
 0x228   :  { %1161 = vperm.xlu1 %2477, %v815_v22  }
 0x22a   :  { %1116 = vperm.xlu0 %2478, %v3199_v38  }
 0x22b   :  { %v3299_v39 = vpop.permute.xlu1 %1016  ;;  %v3301_v47 = vpop.permute.xlu0 %1026 }
 0x22c   :  { %3819 = vst [vmem:[#allocation42_spill] sm:$0xff] %v3299_v39  ;;  %1156 = vperm.xlu1 %2477, %v814_v9   ;;  %3820 = vst [vmem:[#allocation43_spill] sm:$0xff] %v3301_v47 }
 0x22e   :  { %1126 = vperm.xlu0 %2478, %v3170_v1  }
 0x22f   :  { %v3304_v29 = vpop.permute.xlu1 %883  ;;  %v3307_v5 = vpop.permute.xlu0 %893 }
 0x230   :  { %1146 = vperm.xlu1 %2477, %v3222_v42  }
 0x232   :  { %1136 = vperm.xlu0 %2478, %v810_v49  }
 0x233   :  { %v3309_v28 = vpop.permute.xlu1 %1041  ;;  %v3313_v20 = vpop.permute.xlu0 %889 }
 0x234   :  { %3821 = vst [vmem:[#allocation44_spill] sm:$0xff] %v3309_v28  ;;  %2479 = vset.pattern.permute.xlu1 %v2701_v12 }
 0x236   :  { %1166 = vperm.xlu0 %2478, %v816_v48  }
 0x237   :  { %v3311_v38 = vpop.permute.xlu1 %1031 }
 0x238   :  { %3822 = vst [vmem:[#allocation45_spill] sm:$0xff] %v3311_v38 }
 0x23a   :  { %1151 = vperm.xlu0 %2478, %v813_v10  }
 0x23b   :  { %v3315_v22 = vpop.permute.xlu1 %895 }
 0x23d   :  { %v3317_v1 = vpop.permute.xlu0 %1046 }
 0x23e   :  { %3823 = vst [vmem:[#allocation46_spill] sm:$0xff] %v3317_v1  ;;  %1141 = vperm.xlu0 %2478, %v3237_v36  }
 0x23f   :  { %v3320_v42 = vpop.permute.xlu1 %891 }
 0x241   :  { %v3322_v49 = vpop.permute.xlu0 %1036 }
 0x242   :  { %3824 = vst [vmem:[#allocation47_spill] sm:$0xff] %v3322_v49  ;;  %2480 = vset.pattern.permute.xlu0 %v2701_v12 }
 0x243   :  { %v3324_v56 = vpop.permute.xlu1 %1061 }
 0x245   :  { %v902_v8 = vpop.permute.xlu0 %901 }
 0x246   :  { %v987_v40 = vsub.f32 %v3012_v45, %v902_v8 }
 0x247   :  { %v3327_v48 = vpop.permute.xlu1 %1051 }
 0x248   :  { %3825 = vst [vmem:[#allocation48_spill] sm:$0xff] %v3327_v48  ;;  %1253 = vperm.xlu1 %2479, %v987_v40  }
 0x249   :  { %v898_v10 = vpop.permute.xlu0 %897 }
 0x24a   :  { %v985_v15 = vsub.f32 %v3023_v25, %v898_v10 }
 0x24b   :  { %v904_v54 = vpop.permute.xlu1 %903 }
 0x24c   :  { %v988_v3 = vsub.f32 %v3028_v41, %v904_v54  ;;  %1243 = vperm.xlu0 %2480, %v985_v15  }
 0x24d   :  { %v3331_v36 = vpop.permute.xlu0 %1066 }
 0x24e   :  { %3826 = vst [vmem:[#allocation49_spill] sm:$0xff] %v3331_v36  ;;  %1258 = vperm.xlu1 %2479, %v988_v3  }
 0x24f   :  { %v900_v9 = vpop.permute.xlu1 %899 }
 0x250   :  { %v986_v50 = vsub.f32 %v3037_v14, %v900_v9 }
 0x251   :  { %v3334_v12 = vpop.permute.xlu0 %1056 }
 0x252   :  { %3827 = vst [vmem:[#allocation50_spill] sm:$0xff] %v3334_v12  ;;  %1248 = vperm.xlu1 %2479, %v986_v50  }
 0x253   :  { %v3336_v8 = vpop.permute.xlu1 %1081 }
 0x255   :  { %v910_v31 = vpop.permute.xlu0 %909 }
 0x256   :  { %v991_v40 = vsub.f32 %v3060_v61, %v910_v31 }
 0x257   :  { %v3339_v39 = vpop.permute.xlu1 %1071 }
 0x258   :  { %3828 = vst [vmem:[#allocation51_spill] sm:$0xff] %v3339_v39  ;;  %1273 = vperm.xlu1 %2479, %v991_v40  }
 0x259   :  { %v906_v10 = vpop.permute.xlu0 %905 }
 0x25a   :  { %v989_v15 = vsub.f32 %v3071_v24, %v906_v10 }
 0x25b   :  { %v912_v54 = vpop.permute.xlu1 %911 }
 0x25c   :  { %1263 = vperm.xlu1 %2479, %v989_v15   ;;  %v992_v9 = vsub.f32 %v3076_v63, %v912_v54 }
 0x25d   :  { %v3342_v3 = vpop.permute.xlu0 %1086 }
 0x25f   :  { %v908_v58 = vpop.permute.xlu1 %907 }
 0x260   :  { %1278 = vperm.xlu1 %2479, %v992_v9   ;;  %v990_v47 = vsub.f32 %v3087_v26, %v908_v58 }
 0x261   :  { %v3345_v50 = vpop.permute.xlu0 %1076 }
 0x262   :  { %3829 = vst [vmem:[#allocation52_spill] sm:$0xff] %v3345_v50 }
 0x264   :  { %1268 = vperm.xlu1 %2479, %v990_v47  }
 0x265   :  { %v918_v31 = vpop.permute.xlu0 %917 }
 0x267   :  { %v3348_v49 = vpop.permute.xlu1 %1091 }
 0x268   :  { %3830 = vst [vmem:[#allocation53_spill] sm:$0xff] %v3348_v49 }
 0x269   :  { %v3350_v40 = vpop.permute.xlu0 %913 }
 0x26b   :  { %v920_v38 = vpop.permute.xlu1 %919 }
 0x26d   :  { %v926_v10 = vpop.permute.xlu0 %925 }
 0x26e   :  { %v999_v15 = vsub.f32 %v3175_v30, %v926_v10 }
 0x26f   :  { %v916_v1 = vpop.permute.xlu1 %915 }
 0x270   :  { %1313 = vperm.xlu0 %2480, %v999_v15  }
 0x271   :  { %v922_v48 = vpop.permute.xlu0 %921 }
 0x273   :  { %v928_v28 = vpop.permute.xlu1 %927 }
 0x274   :  { %v1000_v54 = vsub.f32 %v3161_v23, %v928_v28 }
 0x276   :  { %1318 = vperm.xlu1 %2479, %v1000_v54  }
 0x277   :  { %v924_v9 = vpop.permute.xlu1 %923 }
 0x27b   :  { %v936_v12 = vpop.permute.xlu1 %935 }
 0x27c   :  { %v1004_v10 = vsub.f32 %v3217_v4, %v936_v12  ;;  %v998_v12 = vsub.f32 %v3183_v0, %v924_v9  ;;  %v983_v9 = vsub.f32 %v2965_v53, %v3307_v5  ;;  %v2625_v5 = vld [vmem:[%s3760_s3 + $0x10] sm:$0xff] }
 0x27d   :  { %v934_v58 = vpop.permute.xlu0 %933 }
 0x27e   :  { %v1003_v47 = vsub.f32 %v3227_v44, %v934_v58 }
 0x27f   :  { %v932_v49 = vpop.permute.xlu1 %931 }
 0x280   :  { %1333 = vperm.xlu1 %2479, %v1003_v47   ;;  %v1002_v36 = vsub.f32 %v3232_v43, %v932_v49 }
 0x281   :  { %v930_v39 = vpop.permute.xlu0 %929 }
 0x282   :  { %v1001_v50 = vsub.f32 %v3242_v16, %v930_v39  ;;  %v984_v39 = vsub.f32 %v2980_v18, %v3315_v22  ;;  %v980_v22 = vsub.f32 %v2927_v2, %v3294_v7  ;;  %v995_v2 = vsub.f32 %v3110_v60, %v918_v31  ;;  %v2518_v31 = vld [vmem:[%s3759_s2 + $0x44] ss:$8 sps:$4 sm:$0xff]  }
 0x283   :  { %v2702_v7 = vmov 2   ;;  %1857 = vmatprep.mubr.bf16.mxu1 %v2518_v31 }
 0x284   :  { %1323 = vperm.xlu0 %2480, %v1001_v50   ;;  %1328 = vperm.xlu1 %2479, %v1002_v36  }
 0x288   :  { %1338 = vperm.xlu0 %2480, %v1004_v10   ;;  %v982_v10 = vsub.f32 %v2989_v55, %v3320_v42  ;;  %v994_v42 = vsub.f32 %v3140_v27, %v916_v1  ;;  %v979_v1 = vsub.f32 %v2625_v5, %v3287_v6  ;;  %v2515_v6 = vld [vmem:[%s3759_s2 + $0x4] ss:$8 sps:$4 sm:$0xff]  }
 0x289   :  { %1825 = vmatprep.mubr.bf16.mxu0 %v2515_v6 }
 0x28b   :  { %v3358_v28 = vpop.permute.xlu1 %1101 }
 0x28c   :  { %v942_v15 = vpop.permute.xlu0 %941 }
 0x28d   :  { %v1007_v54 = vsub.f32 %v3258_v11, %v942_v15 }
 0x28f   :  { %1353 = vperm.xlu1 %2479, %v1007_v54   ;;  %v3361_v23 = vpop.permute.xlu1 %1111 }
 0x290   :  { %v938_v58 = vpop.permute.xlu0 %937 }
 0x291   :  { %v1005_v47 = vsub.f32 %v3264_v33, %v938_v58  ;;  %v996_v58 = vsub.f32 %v3126_v59, %v920_v38  ;;  %v978_v38 = vsub.f32 %v2942_v32, %v3304_v29  ;;  %v993_v29 = vsub.f32 %v3121_v35, %v3350_v40 }
 0x292   :  { %v2703_v40 = vmov 3  }
 0x293   :  { %1343 = vperm.xlu1 %2479, %v1005_v47   ;;  %v3364_v49 = vpop.permute.xlu1 %1121 }
 0x297   :  { %1238 = vperm.xlu1 %2479, %v984_v39   ;;  %v3368_v36 = vpop.permute.xlu1 %1131  ;;  %v997_v39 = vsub.f32 %v3193_v34, %v922_v48 }
 0x29b   :  { %1308 = vperm.xlu1 %2479, %v998_v12   ;;  %v944_v50 = vpop.permute.xlu1 %943  ;;  %v981_v12 = vsub.f32 %v2975_v17, %v3313_v20  ;;  %v2626_v20 = vld [vmem:[%s3760_s3] sm:$0xff] }
 0x29c   :  { %v1008_v15 = vsub.f32 %v3269_v57, %v944_v50  ;;  %v977_v48 = vsub.f32 %v2626_v20, %v3296_v21 }
 0x29e   :  { %1358 = vperm.xlu0 %2480, %v1008_v15  }
 0x29f   :  { %1228 = vperm.xlu1 %2479, %v982_v10   ;;  %v940_v54 = vpop.permute.xlu1 %939 }
 0x2a0   :  { %v1006_v47 = vsub.f32 %v3278_v62, %v940_v54 }
 0x2a2   :  { %1348 = vperm.xlu0 %2480, %v1006_v47  }
 0x2a3   :  { %1298 = vperm.xlu1 %2479, %v996_v58   ;;  %v3410_v21 = vpop.permute.xlu1 %1161 }
 0x2a6   :  { %1233 = vperm.xlu0 %2480, %v983_v9   ;;  %v2628_v9 = vld [vmem:[%s3760_s3 + $0x38] sm:$0xff] }
 0x2a7   :  { %1218 = vperm.xlu1 %2479, %v980_v22   ;;  %v3416_v50 = vpop.permute.xlu1 %1156 }
 0x2aa   :  { %1303 = vperm.xlu0 %2480, %v997_v39  }
 0x2ab   :  { %1288 = vperm.xlu1 %2479, %v994_v42   ;;  %v3420_v10 = vpop.permute.xlu1 %1146 }
 0x2ae   :  { %1223 = vperm.xlu0 %2480, %v981_v12  }
 0x2af   :  { %1208 = vperm.xlu1 %2479, %v978_v38  }
 0x2b2   :  { %1293 = vperm.xlu0 %2480, %v995_v2  }
 0x2b3   :  { %2481 = vset.pattern.permute.xlu1 %v2702_v7 }
 0x2b4   :  { %1480 = vperm.xlu1 %2481, %v2942_v32  }
 0x2b6   :  { %1213 = vperm.xlu0 %2480, %v979_v1   ;;  %v1183_v1 = vmul.f32 %v2791_v46, %v3336_v8  ;;  %v3833_v46 = vld [vmem:[#allocation51_spill] sm:$0xff] }
 0x2b8   :  { %1485 = vperm.xlu1 %2481, %v2625_v5  }
 0x2ba   :  { %1283 = vperm.xlu0 %2480, %v993_v29  }
 0x2bc   :  { %1495 = vperm.xlu1 %2481, %v2975_v17  }
 0x2be   :  { %1203 = vperm.xlu0 %2480, %v977_v48  }
 0x2c0   :  { %1505 = vperm.xlu1 %2481, %v2965_v53  }
 0x2c2   :  { %2483 = vset.pattern.permute.xlu0 %v2703_v40 }
 0x2c3   :  { %1991 = vperm.xlu0 %2483, %v2942_v32   ;;  %v3424_v32 = vpop.permute.xlu1 %1253 }
 0x2c4   :  { %1515 = vperm.xlu1 %2481, %v3023_v25  }
 0x2c7   :  { %2003 = vperm.xlu0 %2483, %v2975_v17  }
 0x2c8   :  { %1525 = vperm.xlu1 %2481, %v3012_v45  }
 0x2c9   :  { %v3430_v17 = vpop.permute.xlu1 %1258 }
 0x2cb   :  { %2011 = vperm.xlu0 %2483, %v2965_v53   ;;  %v3428_v53 = vpop.permute.xlu0 %1096 }
 0x2cc   :  { %1535 = vperm.xlu1 %2481, %v3071_v24  }
 0x2cf   :  { %2019 = vperm.xlu0 %2483, %v3023_v25   ;;  %v3434_v25 = vpop.permute.xlu0 %1106 }
 0x2d0   :  { %1545 = vperm.xlu1 %2481, %v3060_v61  }
 0x2d3   :  { %2027 = vperm.xlu0 %2483, %v3012_v45   ;;  %v3438_v45 = vpop.permute.xlu1 %1248 }
 0x2d4   :  { %1555 = vperm.xlu1 %2481, %v3121_v35  }
 0x2d7   :  { %2035 = vperm.xlu0 %2483, %v3071_v24   ;;  %v3442_v24 = vpop.permute.xlu0 %1116  ;;  %v1274_v15 = vpop.permute.xlu1 %1273 }
 0x2d8   :  { %1565 = vperm.xlu1 %2481, %v3110_v60   ;;  %v1375_v6 = vadd.f32 %v1274_v15, %v1183_v1 }
 0x2db   :  { %2043 = vperm.xlu0 %2483, %v3060_v61   ;;  %v3446_v61 = vpop.permute.xlu0 %1126  ;;  %v3448_v54 = vpop.permute.xlu1 %1263 }
 0x2dc   :  { %1575 = vperm.xlu1 %2481, %v3193_v34  }
 0x2df   :  { %2051 = vperm.xlu0 %2483, %v3121_v35   ;;  %v3454_v35 = vpop.permute.xlu0 %1136 }
 0x2e0   :  { %1585 = vperm.xlu1 %2481, %v3175_v30  }
 0x2e3   :  { %2059 = vperm.xlu0 %2483, %v3110_v60   ;;  %v1279_v60 = vpop.permute.xlu1 %1278 }
 0x2e4   :  { %1595 = vperm.xlu1 %2481, %v3242_v16  }
 0x2e7   :  { %2067 = vperm.xlu0 %2483, %v3193_v34   ;;  %v1167_v34 = vpop.permute.xlu0 %1166  ;;  %v1269_v58 = vpop.permute.xlu1 %1268 }
 0x2e8   :  { %1605 = vperm.xlu1 %2481, %v3227_v44  }
 0x2eb   :  { %2075 = vperm.xlu0 %2483, %v3175_v30   ;;  %v2627_v30 = vld [vmem:[%s3760_s3 + $0x18] sm:$0xff]  ;;  %v1152_v47 = vpop.permute.xlu0 %1151 }
 0x2ec   :  { %1615 = vperm.xlu1 %2481, %v3264_v33  }
 0x2ef   :  { %2083 = vperm.xlu0 %2483, %v3242_v16  }
 0x2f0   :  { %2482 = vset.pattern.permute.xlu1 %v2703_v40 }
 0x2f1   :  { %1987 = vperm.xlu1 %2482, %v2626_v20   ;;  %v3461_v16 = vpop.permute.xlu1 %1318 }
 0x2f3   :  { %2091 = vperm.xlu0 %2483, %v3227_v44   ;;  %v1142_v44 = vpop.permute.xlu0 %1141 }
 0x2f5   :  { %1995 = vperm.xlu1 %2482, %v2625_v5  }
 0x2f7   :  { %2484 = vset.pattern.permute.xlu0 %v2702_v7  ;;  %v3470_v39 = vpop.permute.xlu0 %1243 }
 0x2f8   :  { %1475 = vperm.xlu0 %2484, %v2626_v20   ;;  %v1200_v20 = vmul.f32 %v2881_v19, %v1167_v34  ;;  %v3835_v19 = vld [vmem:[#allocation37_spill] sm:$0xff] }
 0x2f9   :  { %1999 = vperm.xlu1 %2482, %v2627_v30   ;;  %v1197_v34 = vmul.f32 %v1152_v47, %v3835_v19 }
 0x2fb   :  { %v1334_v22 = vpop.permute.xlu1 %1333  ;;  %v3474_v12 = vpop.permute.xlu0 %1313 }
 0x2fc   :  { %1490 = vperm.xlu0 %2484, %v2627_v30  }
 0x2fd   :  { %2007 = vperm.xlu1 %2482, %v2989_v55  }
 0x2ff   :  { %v1329_v42 = vpop.permute.xlu1 %1328 }
 0x300   :  { %1500 = vperm.xlu0 %2484, %v2989_v55   ;;  %v1324_v55 = vpop.permute.xlu0 %1323 }
 0x301   :  { %2015 = vperm.xlu1 %2482, %v2980_v18  }
 0x304   :  { %1510 = vperm.xlu0 %2484, %v2628_v9   ;;  %v1339_v5 = vpop.permute.xlu0 %1338 }
 0x305   :  { %2023 = vperm.xlu1 %2482, %v3037_v14  }
 0x308   :  { %1520 = vperm.xlu0 %2484, %v3037_v14   ;;  %v1184_v14 = vmul.f32 %v2801_v51, %v3342_v3  ;;  %v1179_v51 = vmul.f32 %v2771_v37, %v3324_v56  ;;  %v3837_v37 = vld [vmem:[#allocation33_spill] sm:$0xff] }
 0x309   :  { %2031 = vperm.xlu1 %2482, %v3028_v41   ;;  %v1195_v56 = vmul.f32 %v3837_v37, %v1142_v44 }
 0x30a   :  { %v1354_v38 = vpop.permute.xlu1 %1353  ;;  %v1376_v29 = vadd.f32 %v1279_v60, %v1184_v14 }
 0x30c   :  { %1530 = vperm.xlu0 %2484, %v3028_v41   ;;  %v1199_v41 = vmul.f32 %v2868_v13, %v3410_v21  ;;  %v3832_v13 = vld [vmem:[#allocation24_spill] sm:$0xff]  ;;  %v3834_v21 = vld [vmem:[#allocation35_spill] sm:$0xff] }
 0x30d   :  { %2039 = vperm.xlu1 %2482, %v3087_v26   ;;  %v1181_v8 = vmul.f32 %v3833_v46, %v3832_v13  ;;  %v1196_v60 = vmul.f32 %v3834_v21, %v3420_v10  ;;  %v3839_v13 = vld [vmem:[#allocation22_spill] sm:$0xff] }
 0x30e   :  { %v1344_v18 = vpop.permute.xlu1 %1343  ;;  %v1391_v48 = vadd.f32 %v1354_v38, %v1199_v41  ;;  %v1408_v38 = vmax.f32 %v1376_v29, 0.0  ;;  %v3840_v10 = vld [vmem:[#allocation34_spill] sm:$0xff] }
 0x30f   :  { %v1388_v15 = vadd.f32 %v1339_v5, %v1196_v60  ;;  %v1389_v41 = vadd.f32 %v1344_v18, %v1197_v34  ;;  %v1193_v47 = vmul.f32 %v3368_v36, %v3840_v10  ;;  %v1387_v5 = vadd.f32 %v1334_v22, %v1195_v56  ;;  %v3843_v34 = vld [vmem:[#allocation50_spill] sm:$0xff] }
 0x310   :  { %1540 = vperm.xlu0 %2484, %v3087_v26   ;;  %v1423_v14 = vmax.f32 %v1391_v48, 0.0 }
 0x311   :  { %2047 = vperm.xlu1 %2482, %v3076_v63   ;;  %v1385_v60 = vadd.f32 %v1324_v55, %v1193_v47  ;;  %v1421_v19 = vmax.f32 %v1389_v41, 0.0  ;;  %v3846_v55 = vld [vmem:[#allocation31_spill] sm:$0xff]  ;;  %v1419_v56 = vmax.f32 %v1387_v5, 0.0  ;;  %v3850_v47 = vld [vmem:[#allocation17_spill] sm:$0xff] }
 0x312   :  { %v3479_v2 = vpop.permute.xlu1 %1238 }
 0x314   :  { %1550 = vperm.xlu0 %2484, %v3076_v63   ;;  %v3831_v63 = vld [vmem:[#allocation52_spill] sm:$0xff] }
 0x315   :  { %2055 = vperm.xlu1 %2482, %v3140_v27   ;;  %v1182_v3 = vmul.f32 %v3831_v63, %v2805_v52  ;;  %v3838_v63 = vld [vmem:[#allocation49_spill] sm:$0xff] }
 0x316   :  { %v3490_v26 = vpop.permute.xlu1 %1308  ;;  %v1180_v46 = vmul.f32 %v3839_v13, %v3838_v63  ;;  %v1417_v13 = vmax.f32 %v1385_v60, 0.0 }
 0x317   :  { %v1374_v52 = vadd.f32 %v1269_v58, %v1182_v3  ;;  %v3841_v58 = vld [vmem:[#allocation36_spill] sm:$0xff] }
 0x318   :  { %1560 = vperm.xlu0 %2484, %v3140_v27   ;;  %v3836_v27 = vld [vmem:[#allocation38_spill] sm:$0xff]  ;;  %v1194_v18 = vmul.f32 %v3454_v35, %v3841_v58  ;;  %v1372_v48 = vadd.f32 %v3430_v17, %v1180_v46  ;;  %v3845_v17 = vld [vmem:[#allocation48_spill] sm:$0xff] }
 0x319   :  { %v1359_v31 = vpop.permute.xlu0 %1358  ;;  %2063 = vperm.xlu1 %2482, %v3126_v59   ;;  %v1198_v9 = vmul.f32 %v3416_v50, %v3836_v27  ;;  %v1406_v21 = vmax.f32 %v1374_v52, 0.0  ;;  %v1371_v27 = vadd.f32 %v3424_v32, %v1179_v51  ;;  %v3847_v52 = vld [vmem:[#allocation39_spill] sm:$0xff] }
 0x31a   :  { %v1392_v30 = vadd.f32 %v1359_v31, %v1200_v20  ;;  %v1407_v20 = vmax.f32 %v1375_v6, 0.0  ;;  %v1373_v31 = vadd.f32 %v3448_v54, %v1181_v8  ;;  %v3513_v50 = vpop.permute.xlu1 %1228  ;;  %v1386_v36 = vadd.f32 %v1329_v42, %v1194_v18  ;;  %v3842_v8 = vld [vmem:[#allocation23_spill] sm:$0xff] }
 0x31b   :  { %v1420_v6 = vmax.f32 %v1388_v15, 0.0  ;;  %v1192_v42 = vmul.f32 %v3846_v55, %v3446_v61  ;;  %v3848_v15 = vld [vmem:[#allocation29_spill] sm:$0xff]  ;;  %v1404_v32 = vmax.f32 %v1372_v48, 0.0  ;;  %v3849_v61 = vld [vmem:[#allocation44_spill] sm:$0xff]  ;;  %v3853_v18 = vld [vmem:[#allocation19_spill] sm:$0xff] }
 0x31c   :  { %v1424_v1 = vmax.f32 %v1392_v30, 0.0  ;;  %1570 = vperm.xlu0 %2484, %v3126_v59   ;;  %v1464_v3 = vpack.c.bf16 %v1408_v38, %v1407_v20  ;;  %v1178_v30 = vmul.f32 %v3843_v34, %v3842_v8  ;;  %v1405_v35 = vmax.f32 %v1373_v31, 0.0 }
 0x31d   :  { %v1349_v44 = vpop.permute.xlu0 %1348  ;;  %2071 = vperm.xlu1 %2482, %v3183_v0   ;;  %v1384_v63 = vadd.f32 %v3461_v16, %v1192_v42  ;;  %v1418_v46 = vmax.f32 %v1386_v36, 0.0  ;;  %v1470_v10 = vpack.c.bf16 %v1420_v6, %v1419_v56  ;;  %v1403_v20 = vmax.f32 %v1371_v27, 0.0  ;;  %v3852_v16 = vld [vmem:[#allocation46_spill] sm:$0xff]  ;;  %v3860_v42 = vld [vmem:[#allocation27_spill] sm:$0xff] }
 0x31e   :  { %v1472_v29 = vpack.c.bf16 %v1424_v1, %v1423_v14  ;;  %v1390_v59 = vadd.f32 %v1349_v44, %v1198_v9  ;;  %v3844_v9 = vld [vmem:[#allocation21_spill] sm:$0xff]  ;;  %v1191_v14 = vmul.f32 %v3848_v15, %v3364_v49  ;;  %v1370_v51 = vadd.f32 %v3438_v45, %v1178_v30  ;;  %v1299_v1 = vpop.permute.xlu1 %1298  ;;  %v3851_v49 = vld [vmem:[#allocation30_spill] sm:$0xff] }
 0x31f   :  { %v1177_v37 = vmul.f32 %v3845_v17, %v3844_v9  ;;  %v1463_v41 = vpack.c.bf16 %v1406_v21, %v1405_v35  ;;  %v1189_v45 = vmul.f32 %v3361_v23, %v3851_v49  ;;  %v1176_v5 = vmul.f32 %v3853_v18, %v3852_v16  ;;  %v3855_v36 = vld [vmem:[#allocation18_spill] sm:$0xff]  ;;  %v3857_v35 = vld [vmem:[#allocation20_spill] sm:$0xff]  ;;  %v3867_v16 = vld [vmem:[#allocation53_spill] sm:$0xff] }
 0x320   :  { %v1422_v54 = vmax.f32 %v1390_v59, 0.0  ;;  %2290 = vmatprep.subr.bf16.mxu0 %v1472_v29  ;;  %2450 = vmatprep.subr.bf16.mxu1 %v1472_v29  ;;  %v1383_v58 = vadd.f32 %v3474_v12, %v1191_v14  ;;  %v1462_v29 = vpack.c.bf16 %v1404_v32, %v1403_v20  ;;  %v1402_v59 = vmax.f32 %v1370_v51, 0.0  ;;  %v3856_v12 = vld [vmem:[#allocation45_spill] sm:$0xff]  ;;  %v3861_v32 = vld [vmem:[#allocation43_spill] sm:$0xff] }
 0x321   :  { %v1234_v22 = vpop.permute.xlu0 %1233  ;;  %2291 = vmatpush3.bf16.msra.mxu0 %v1464_v3  ;;  %2458 = vmatpush3.bf16.msra.mxu1 %v1464_v3  ;;  %v1369_v31 = vadd.f32 %v3470_v39, %v1177_v37  ;;  %v3854_v39 = vld [vmem:[#allocation32_spill] sm:$0xff]  ;;  %v1416_v21 = vmax.f32 %v1384_v63, 0.0  ;;  %v1469_v60 = vpack.c.bf16 %v1418_v46, %v1417_v13  ;;  %v1173_v6 = vmul.f32 %v3856_v12, %v3855_v36  ;;  %v3862_v51 = vld [vmem:[#allocation15_spill] sm:$0xff]  ;;  %v3871_v12 = vld [vmem:[#allocation41_spill] sm:$0xff] }
 0x322   :  { %v1471_v38 = vpack.c.bf16 %v1422_v54, %v1421_v19  ;;  %1580 = vperm.xlu0 %2484, %v3183_v0   ;;  %2079 = vperm.xlu1 %2482, %v3847_v52   ;;  %v1175_v0 = vmul.f32 %v3850_v47, %v3849_v61  ;;  %v1190_v3 = vmul.f32 %v3442_v24, %v3854_v39  ;;  %v1219_v8 = vpop.permute.xlu1 %1218  ;;  %v1415_v30 = vmax.f32 %v1383_v58, 0.0  ;;  %v3858_v24 = vld [vmem:[#allocation47_spill] sm:$0xff] }
 0x323   :  { %v1401_v19 = vmax.f32 %v1369_v31, 0.0  ;;  %v1368_v54 = vadd.f32 %v3479_v2, %v1176_v5  ;;  %v3859_v2 = vld [vmem:[#allocation25_spill] sm:$0xff]  ;;  %v1188_v56 = vmul.f32 %v3860_v42, %v3434_v25  ;;  %v3863_v25 = vld [vmem:[#allocation40_spill] sm:$0xff] }
 0x324   :  { %2292 = vmatprep.subr.bf16.mxu0 %v1471_v38  ;;  %2451 = vmatprep.subr.bf16.mxu1 %v1471_v38  ;;  %v1367_v48 = vadd.f32 %v1234_v22, %v1175_v0  ;;  %v1382_v27 = vadd.f32 %v3490_v26, %v1190_v3  ;;  %v1174_v22 = vmul.f32 %v3858_v24, %v3857_v35  ;;  %v3868_v3 = vld [vmem:[#allocation16_spill] sm:$0xff]  ;;  %v2527_v42 = vld [vmem:[%s3759_s2 + $0x64] ss:$8 sps:$4 sm:$0xff]  }
 0x325   :  { %v1304_v44 = vpop.permute.xlu0 %1303  ;;  %2293 = vmatpush3.bf16.msra.mxu0 %v1463_v41  ;;  %2459 = vmatpush3.bf16.msra.mxu1 %v1463_v41  ;;  %v1461_v9 = vpack.c.bf16 %v1402_v59, %v1401_v19  ;;  %v1187_v55 = vmul.f32 %v3859_v2, %v3358_v28  ;;  %v1468_v38 = vpack.c.bf16 %v1416_v21, %v1415_v30  ;;  %v3869_v21 = vld [vmem:[#allocation42_spill] sm:$0xff] }
 0x326   :  { %2294 = vmatprep.subr.bf16.mxu0 %v1470_v10  ;;  %2452 = vmatprep.subr.bf16.mxu1 %v1470_v10  ;;  %v1381_v23 = vadd.f32 %v1304_v44, %v1189_v45  ;;  %v1399_v17 = vmax.f32 %v1367_v48, 0.0  ;;  %v1366_v15 = vadd.f32 %v3513_v50, %v1174_v22  ;;  %v1172_v41 = vmul.f32 %v3862_v51, %v3861_v32  ;;  %v1289_v46 = vpop.permute.xlu1 %1288  ;;  %v3864_v50 = vld [vmem:[#allocation13_spill] sm:$0xff]  ;;  %v2524_v2 = vld [vmem:[%s3759_s2 + $0x50] ss:$8 sps:$4 sm:$0xff]  }
 0x327   :  { %1590 = vperm.xlu0 %2484, %v3847_v52   ;;  %2087 = vperm.xlu1 %2482, %v3232_v43   ;;  %v1400_v52 = vmax.f32 %v1368_v54, 0.0  ;;  %v1380_v63 = vadd.f32 %v1299_v1, %v1188_v56  ;;  %v1171_v61 = vmul.f32 %v3864_v50, %v3863_v25  ;;  %v3865_v1 = vld [vmem:[#allocation28_spill] sm:$0xff]  ;;  %v2537_v32 = vld [vmem:[%s3759_s2 + $0x84] ss:$8 sps:$4 sm:$0xff]  }
 0x328   :  { %v1413_v26 = vmax.f32 %v1381_v23, 0.0  ;;  %v1364_v47 = vadd.f32 %v1219_v8, %v1172_v41  ;;  %v1398_v31 = vmax.f32 %v1366_v15, 0.0  ;;  %v1186_v49 = vmul.f32 %v3428_v53, %v3865_v1  ;;  %v2529_v56 = vld [vmem:[%s3759_s2 + $0x20] ss:$8 sps:$4 sm:$0xff]   ;;  %v2535_v15 = vld [vmem:[%s3759_s2 + $0x30] ss:$8 sps:$4 sm:$0xff]  }
 0x329   :  { %v1224_v34 = vpop.permute.xlu0 %1223  ;;  %2295 = vmatpush3.bf16.msra.mxu0 %v1462_v29  ;;  %2460 = vmatpush3.bf16.msra.mxu1 %v1462_v29  ;;  %v1460_v28 = vpack.c.bf16 %v1400_v52, %v1399_v17  ;;  %v1412_v45 = vmax.f32 %v1380_v63, 0.0  ;;  %v2516_v17 = vld [vmem:[%s3759_s2 + $0x40] ss:$8 sps:$4 sm:$0xff]   ;;  %v2533_v52 = vld [vmem:[%s3759_s2 + $0x74] ss:$8 sps:$4 sm:$0xff]  }
 0x32a   :  { %2296 = vmatprep.subr.bf16.mxu0 %v1469_v60  ;;  %2453 = vmatprep.subr.bf16.mxu1 %v1469_v60  ;;  %v1365_v37 = vadd.f32 %v1224_v34, %v1173_v6  ;;  %v1396_v5 = vmax.f32 %v1364_v47, 0.0  ;;  %v1378_v29 = vadd.f32 %v1289_v46, %v1186_v49  ;;  %v1209_v39 = vpop.permute.xlu1 %1208  ;;  %v1170_v60 = vmul.f32 %v3869_v21, %v3868_v3  ;;  %v2539_v51 = vld [vmem:[%s3759_s2 + $0x80] ss:$8 sps:$4 sm:$0xff]   ;;  %v2540_v41 = vld [vmem:[%s3759_s2 + $0x94] ss:$8 sps:$4 sm:$0xff]  }
 0x32b   :  { %1600 = vperm.xlu0 %2484, %v3232_v43   ;;  %2095 = vperm.xlu1 %2482, %v3217_v4   ;;  %v1414_v43 = vmax.f32 %v1382_v27, 0.0  ;;  %v2543_v63 = vld [vmem:[%s3759_s2 + $0xa4] ss:$8 sps:$4 sm:$0xff]   ;;  %v2548_v46 = vld [vmem:[%s3759_s2 + $0xb0] ss:$8 sps:$4 sm:$0xff]  }
 0x32c   :  { %v1397_v10 = vmax.f32 %v1365_v37, 0.0  ;;  %v1410_v19 = vmax.f32 %v1378_v29, 0.0  ;;  %v1362_v54 = vadd.f32 %v1209_v39, %v1170_v60  ;;  %v2523_v37 = vld [vmem:[%s3759_s2 + $0x10] ss:$8 sps:$4 sm:$0xff]   ;;  %v2551_v25 = vld [vmem:[%s3759_s2 + $0xc0] ss:$8 sps:$4 sm:$0xff]  }
 0x32d   :  { %v1294_v14 = vpop.permute.xlu0 %1293  ;;  %2297 = vmatpush3.bf16.msra.mxu0 %v1461_v9  ;;  %2461 = vmatpush3.bf16.msra.mxu1 %v1461_v9  ;;  %v1467_v0 = vpack.c.bf16 %v1414_v43, %v1413_v26  ;;  %v2513_v9 = vld [vmem:[%s3759_s2] ss:$8 sps:$4 sm:$0xff]   ;;  %v2531_v26 = vld [vmem:[%s3759_s2 + $0x34] ss:$8 sps:$4 sm:$0xff]   ;;  %v2542_v43 = vld [vmem:[%s3759_s2 + $0x90] ss:$8 sps:$4 sm:$0xff]  }
 0x32e   :  { %v1379_v13 = vadd.f32 %v1294_v14, %v1187_v55  ;;  %2298 = vmatprep.subr.bf16.mxu0 %v1468_v38  ;;  %2454 = vmatprep.subr.bf16.mxu1 %v1468_v38  ;;  %v1459_v18 = vpack.c.bf16 %v1398_v31, %v1397_v10  ;;  %v1394_v35 = vmax.f32 %v1362_v54, 0.0  ;;  %v2525_v55 = vld [vmem:[%s3759_s2 + $0x24] ss:$8 sps:$4 sm:$0xff]   ;;  %v2530_v38 = vld [vmem:[%s3759_s2 + $0x60] ss:$8 sps:$4 sm:$0xff]  }
 0x32f   :  { %1610 = vperm.xlu0 %2484, %v3217_v4   ;;  %2099 = vperm.xlu1 %2482, %v3264_v33   ;;  %v3866_v4 = vld [vmem:[#allocation26_spill] sm:$0xff]  ;;  %v2552_v50 = vld [vmem:[%s3759_s2 + $0xd4] ss:$8 sps:$4 sm:$0xff]  }
 0x330   :  { %v1411_v20 = vmax.f32 %v1379_v13, 0.0  ;;  %v1185_v33 = vmul.f32 %v3867_v16, %v3866_v4  ;;  %v2536_v14 = vld [vmem:[%s3759_s2 + $0x70] ss:$8 sps:$4 sm:$0xff]   ;;  %v2545_v13 = vld [vmem:[%s3759_s2 + $0xa0] ss:$8 sps:$4 sm:$0xff]  }
 0x331   :  { %v1214_v44 = vpop.permute.xlu0 %1213  ;;  %2299 = vmatpush3.bf16.msra.mxu0 %v1460_v28  ;;  %2462 = vmatpush3.bf16.msra.mxu1 %v1460_v28  ;;  %v2546_v28 = vld [vmem:[%s3759_s2 + $0xb4] ss:$8 sps:$4 sm:$0xff]   ;;  %v2549_v10 = vld [vmem:[%s3759_s2 + $0xc4] ss:$8 sps:$4 sm:$0xff]   ;;  %v2560_v31 = vld [vmem:[%s3759_s2 + $0xf0] ss:$8 sps:$4 sm:$0xff]  }
 0x332   :  { %v1363_v58 = vadd.f32 %v1214_v44, %v1171_v61  ;;  %2300 = vmatprep.subr.bf16.mxu0 %v1467_v0  ;;  %2455 = vmatprep.subr.bf16.mxu1 %v1467_v0  ;;  %v1466_v59 = vpack.c.bf16 %v1412_v45, %v1411_v20  ;;  %v2554_v61 = vld [vmem:[%s3759_s2 + $0xd0] ss:$8 sps:$4 sm:$0xff]   ;;  %v2555_v47 = vld [vmem:[%s3759_s2 + $0xe4] ss:$8 sps:$4 sm:$0xff]   ;;  %v2557_v0 = vld [vmem:[%s3759_s2 + $0xe0] ss:$8 sps:$4 sm:$0xff]   ;;  %v1481_v44 = vpop.permute.xlu1 %1480 }
 0x333   :  { %1620 = vperm.xlu0 %2484, %v3278_v62   ;;  %2485 = vset.pattern.permute.xlu1 %v2702_v7  ;;  %v3870_v7 = vld [vmem:[#allocation14_spill] sm:$0xff]  ;;  %v2558_v20 = vld [vmem:[%s3759_s2 + $0xf4] ss:$8 sps:$4 sm:$0xff]  }
 0x334   :  { %v1395_v48 = vmax.f32 %v1363_v58, 0.0  ;;  %1630 = vperm.xlu1 %2485, %v3269_v57   ;;  %v1169_v6 = vmul.f32 %v3871_v12, %v3870_v7 }
 0x335   :  { %v1284_v53 = vpop.permute.xlu0 %1283  ;;  %2301 = vmatpush3.bf16.msra.mxu0 %v1459_v18  ;;  %2463 = vmatpush3.bf16.msra.mxu1 %v1459_v18 }
 0x336   :  { %v1458_v23 = vpack.c.bf16 %v1396_v5, %v1395_v48  ;;  %v1377_v36 = vadd.f32 %v1284_v53, %v1185_v33  ;;  %2302 = vmatprep.subr.bf16.mxu0 %v1466_v59  ;;  %2456 = vmatprep.subr.bf16.mxu1 %v1466_v59  ;;  %v1486_v1 = vpop.permute.xlu1 %1485 }
 0x337   :  { %1625 = vperm.xlu0 %2484, %v3258_v11  }
 0x338   :  { %v1409_v8 = vmax.f32 %v1377_v36, 0.0  ;;  %2487 = vset.pattern.permute.xlu1 %v2703_v40 }
 0x339   :  { %v1204_v34 = vpop.permute.xlu0 %1203  ;;  %2303 = vmatpush3.bf16.msra.mxu0 %v1458_v23  ;;  %2464 = vmatpush3.bf16.msra.mxu1 %v1458_v23 }
 0x33a   :  { %v1465_v30 = vpack.c.bf16 %v1410_v19, %v1409_v8  ;;  %v1361_v27 = vadd.f32 %v1204_v34, %v1169_v6  ;;  %2107 = vperm.xlu1 %2487, %v3258_v11   ;;  %v2183_v11 = vld [vmem:[%s3760_s3] sm:$0x1]  ;;  %v3673_v49 = vpop.permute.xlu1 %1495 }
 0x33b   :  { %2486 = vset.pattern.permute.xlu0 %v2703_v40  ;;  %v2704_v40 = vmov 4  }
 0x33c   :  { %v1393_v24 = vmax.f32 %v1361_v27, 0.0  ;;  %2304 = vmatprep.subr.bf16.mxu0 %v1465_v30  ;;  %2457 = vmatprep.subr.bf16.mxu1 %v1465_v30 }
 0x33d   :  { %2103 = vperm.xlu0 %2486, %v3278_v62   ;;  %v2519_v62 = vld [vmem:[%s3759_s2 + $0x14] ss:$8 sps:$4 sm:$0xff]  }
 0x33e   :  { %v1457_v22 = vpack.c.bf16 %v1394_v35, %v1393_v24  ;;  %2111 = vperm.xlu1 %2487, %v3269_v57   ;;  %v2521_v57 = vld [vmem:[%s3759_s2 + $0x54] ss:$8 sps:$4 sm:$0xff]   ;;  %v3675_v45 = vpop.permute.xlu0 %1991  ;;  %v3677_v58 = vpop.permute.xlu1 %1505  ;;  %s2705_s2 = smov [#allocation9]  }
 0x33f   :  { %s2200_s25 = sshll.u32 %s2705_s2, 4  ;;  %s2201_s25 = int_to_ptr.vmem [resolvable:$true] %s2200_s25 }
 0x340   :  { %2305 = vmatpush3.bf16.msra.mxu0 %v1457_v22  ;;  %2465 = vmatpush3.bf16.msra.mxu1 %v1457_v22  ;;  %s2669_s26 = scalar_lea.vmem %s2201_s25, 16  ;;  %s2673_s0 = scalar_lea.vmem %s2201_s25, 32 }
 0x341   :  { %2488 = vset.pattern.permute.xlu0 %v2704_v40  ;;  %p2670_p10 = scmp.ne.s32.totalorder %s2201_s25, %s2669_s26  ;;  %p2674_p11 = scmp.lt.s32.totalorder %s2201_s25, %s2201_s25 }
 0x342   :  { %2186 = vperm.xlu0 %2488, %v2183_v11   ;;  %v3679_v4 = vpop.permute.xlu0 %2003  ;;  %v3681_v16 = vpop.permute.xlu1 %1515  ;;  %p2675_p12 = scmp.lt.s32.totalorder %s2673_s0, %s2669_s26 }
 0x343   :  { %1826 = vmatmul.mubr.bf16.vlgmr.msra.gmra.mxu0 %v2513_v9  ;;  %1858 = vmatmul.mubr.bf16.vlgmr.msra.gmra.mxu1 %v2516_v17 }
 0x344   :  { %1833 = vmatprep.mubr.bf16.mxu0 %v2519_v62  ;;  %1865 = vmatprep.mubr.bf16.mxu1 %v2521_v57  ;;  %p2676_p13 = por %p2675_p12, %p2674_p11 }
 0x346   :  { %v3683_v33 = vpop.permute.xlu0 %2011  ;;  %v3685_v18 = vpop.permute.xlu1 %1525  ;;  %p2677_p0 = pnand %p2676_p13, %p2670_p10 }
 0x34a   :  { %v3687_v5 = vpop.permute.xlu0 %2019  ;;  %v3689_v29 = vpop.permute.xlu1 %1535 }
 0x34b   :  { %1834 = vmatmul.mubr.bf16.gmra.mxu0 %v2523_v37  ;;  %1866 = vmatmul.mubr.bf16.gmra.mxu1 %v2524_v2 }
 0x34c   :  { %1841 = vmatprep.mubr.bf16.mxu0 %v2525_v55  ;;  %1873 = vmatprep.mubr.bf16.mxu1 %v2527_v42 }
 0x34e   :  { %v3691_v59 = vpop.permute.xlu0 %2027  ;;  %v3693_v48 = vpop.permute.xlu1 %1545 }
 0x352   :  { %v3695_v39 = vpop.permute.xlu0 %2035  ;;  %v3697_v53 = vpop.permute.xlu1 %1555 }
 0x353   :  { %1842 = vmatmul.mubr.bf16.gmra.mxu0 %v2529_v56  ;;  %1874 = vmatmul.mubr.bf16.gmra.mxu1 %v2530_v38 }
 0x354   :  { %1849 = vmatprep.mubr.bf16.mxu0 %v2531_v26  ;;  %1881 = vmatprep.mubr.bf16.mxu1 %v2533_v52 }
 0x356   :  { %v3699_v3 = vpop.permute.xlu0 %2043  ;;  %v3701_v21 = vpop.permute.xlu1 %1565 }
 0x35a   :  { %v3703_v60 = vpop.permute.xlu0 %2051  ;;  %v3705_v23 = vpop.permute.xlu1 %1575 }
 0x35b   :  { %1850 = vmatmul.mubr.bf16.gmra.mxu0 %v2535_v15  ;;  %1882 = vmatmul.mubr.bf16.gmra.mxu1 %v2536_v14 }
 0x35c   :  { %1889 = vmatprep.mubr.bf16.mxu1 %v2537_v32 }
 0x35e   :  { %v3707_v36 = vpop.permute.xlu0 %2059  ;;  %v3709_v7 = vpop.permute.xlu1 %1585 }
 0x362   :  { %v3711_v12 = vpop.permute.xlu0 %2067  ;;  %v3713_v6 = vpop.permute.xlu1 %1595 }
 0x363   :  { %1890 = vmatmul.mubr.bf16.gmra.mxu1 %v2539_v51 }
 0x364   :  { %1897 = vmatprep.mubr.bf16.mxu1 %v2540_v41 }
 0x366   :  { %v3715_v19 = vpop.permute.xlu0 %2075  ;;  %v3717_v54 = vpop.permute.xlu1 %1605 }
 0x367   :  { %3872 = vst [vmem:[#allocation52_spill] sm:$0xff] %v3717_v54 }
 0x36a   :  { %v3719_v8 = vpop.permute.xlu0 %2083  ;;  %v3721_v34 = vpop.permute.xlu1 %1615 }
 0x36b   :  { %1898 = vmatmul.mubr.bf16.gmra.mxu1 %v2542_v43  ;;  %3873 = vst [vmem:[#allocation24_spill] sm:$0xff] %v3721_v34 }
 0x36c   :  { %1905 = vmatprep.mubr.bf16.mxu1 %v2543_v63 }
 0x36e   :  { %v3723_v30 = vpop.permute.xlu0 %2091  ;;  %v1988_v27 = vpop.permute.xlu1 %1987 }
 0x36f   :  { %3874 = vst [vmem:[#allocation51_spill] sm:$0xff] %v3723_v30 }
 0x372   :  { %v1996_v24 = vpop.permute.xlu1 %1995 }
 0x373   :  { %1906 = vmatmul.mubr.bf16.gmra.mxu1 %v2545_v13  ;;  %v1476_v35 = vpop.permute.xlu0 %1475 }
 0x374   :  { %1913 = vmatprep.mubr.bf16.mxu1 %v2546_v28 }
 0x376   :  { %v2000_v37 = vpop.permute.xlu1 %1999 }
 0x377   :  { %v1491_v17 = vpop.permute.xlu0 %1490 }
 0x37a   :  { %v2008_v41 = vpop.permute.xlu1 %2007 }
 0x37b   :  { %1914 = vmatmul.mubr.bf16.gmra.mxu1 %v2548_v46  ;;  %v1501_v56 = vpop.permute.xlu0 %1500 }
 0x37c   :  { %1921 = vmatprep.mubr.bf16.mxu1 %v2549_v10 }
 0x37f   :  { %v1511_v28 = vpop.permute.xlu0 %1510 }
 0x383   :  { %1922 = vmatmul.mubr.bf16.gmra.mxu1 %v2551_v25 }
 0x384   :  { %1929 = vmatprep.mubr.bf16.mxu1 %v2552_v50 }
 0x38b   :  { %1930 = vmatmul.mubr.bf16.gmra.mxu1 %v2554_v61 }
 0x38c   :  { %1937 = vmatprep.mubr.bf16.mxu1 %v2555_v47 }
 0x393   :  { %1938 = vmatmul.mubr.bf16.gmra.mxu1 %v2557_v0 }
 0x394   :  { %1945 = vmatprep.mubr.bf16.mxu1 %v2558_v20 }
 0x39b   :  { %1946 = vmatmul.mubr.bf16.gmra.mxu1 %v2560_v31 }
 0x403   :  { %v2306_v22 = vpop.f32.mrf.mxu0  ;;  %v2330_v9 = vpop.f32.mrf.mxu1 }
 0x405   :  { %v2307_v11 = vpop.f32.mrf.mxu0  ;;  %v2331_v62 = vpop.f32.mrf.mxu1 }
 0x406   :  { %v2308_v2 = vadd.f32 %v2307_v11, %v2306_v22  ;;  %v3725_v22 = vpop.permute.xlu1 %2015 }
 0x407   :  { %v2309_v57 = vpop.f32.mrf.mxu0  ;;  %v2333_v40 = vpop.f32.mrf.mxu1 }
 0x408   :  { %v1828_v15 = vadd.f32 %v2308_v2, %v1476_v35 }
 0x409   :  { %v2310_v55 = vpop.f32.mrf.mxu0  ;;  %v2334_v42 = vpop.f32.mrf.mxu1 }
 0x40a   :  { %v2311_v38 = vadd.f32 %v2310_v55, %v2309_v57  ;;  %v1954_v46 = vmax.f32 %v1828_v15, 0.0  ;;  %v1521_v55 = vpop.permute.xlu0 %1520  ;;  %v2024_v34 = vpop.permute.xlu1 %2023 }
 0x40b   :  { %v2312_v26 = vpop.f32.mrf.mxu0  ;;  %v2336_v52 = vpop.f32.mrf.mxu1 }
 0x40c   :  { %v1831_v14 = vadd.f32 %v2311_v38, %v1481_v44  ;;  %v2114_v35 = vmul.f32 %v1988_v27, %v1954_v46 }
 0x40d   :  { %v2313_v32 = vpop.f32.mrf.mxu0  ;;  %v2337_v51 = vpop.f32.mrf.mxu1 }
 0x40e   :  { %v2314_v43 = vadd.f32 %v2313_v32, %v2312_v26  ;;  %v1955_v10 = vmax.f32 %v1831_v14, 0.0  ;;  %v2032_v54 = vpop.permute.xlu1 %2031 }
 0x40f   :  { %v2315_v63 = vpop.f32.mrf.mxu0  ;;  %v2339_v13 = vpop.f32.mrf.mxu1 }
 0x410   :  { %v1836_v25 = vadd.f32 %v2314_v43, %v1486_v1  ;;  %v2115_v44 = vmul.f32 %v3675_v45, %v1955_v10  ;;  %v1531_v10 = vpop.permute.xlu0 %1530 }
 0x411   :  { %v2316_v50 = vpop.f32.mrf.mxu0  ;;  %v2340_v61 = vpop.f32.mrf.mxu1 }
 0x412   :  { %v1956_v47 = vmax.f32 %v1836_v25, 0.0  ;;  %v2317_v0 = vadd.f32 %v2316_v50, %v2315_v63  ;;  %v2146_v32 = vadd.f32 %v2115_v44, %v2114_v35 }
 0x413   :  { %v2318_v20 = vpop.f32.mrf.mxu0  ;;  %v2342_v31 = vpop.f32.mrf.mxu1 }
 0x414   :  { %v1839_v11 = vadd.f32 %v2317_v0, %v1491_v17  ;;  %v2116_v38 = vmul.f32 %v1996_v24, %v1956_v47 }
 0x415   :  { %v2319_v57 = vpop.f32.mrf.mxu0  ;;  %v2343_v2 = vpop.f32.mrf.mxu1 }
 0x416   :  { %v1957_v26 = vmax.f32 %v1839_v11, 0.0  ;;  %v2320_v15 = vadd.f32 %v2319_v57, %v2318_v20  ;;  %v2147_v30 = vadd.f32 %v2146_v32, %v2116_v38  ;;  %v2332_v20 = vadd.f32 %v2331_v62, %v2330_v9  ;;  %v1541_v62 = vpop.permute.xlu0 %1540 }
 0x417   :  { %v2321_v14 = vpop.f32.mrf.mxu0  ;;  %v2345_v1 = vpop.f32.mrf.mxu1 }
 0x418   :  { %v2117_v43 = vmul.f32 %v2000_v37, %v1957_v26  ;;  %v1844_v63 = vadd.f32 %v2320_v15, %v3673_v49  ;;  %v2335_v49 = vadd.f32 %v2334_v42, %v2333_v40  ;;  %v1860_v32 = vadd.f32 %v2332_v20, %v3681_v16 }
 0x419   :  { %v2322_v25 = vpop.f32.mrf.mxu0  ;;  %v2346_v50 = vpop.f32.mrf.mxu1 }
 0x41a   :  { %v1958_v27 = vmax.f32 %v1844_v63, 0.0  ;;  %v2323_v46 = vadd.f32 %v2322_v25, %v2321_v14  ;;  %v2148_v0 = vadd.f32 %v2147_v30, %v2117_v43  ;;  %v2338_v43 = vadd.f32 %v2337_v51, %v2336_v52 }
 0x41b   :  { %v2324_v45 = vpop.f32.mrf.mxu0  ;;  %v2348_v17 = vpop.f32.mrf.mxu1  ;;  %v1863_v9 = vadd.f32 %v2335_v49, %v1521_v55  ;;  %v2347_v20 = vadd.f32 %v2346_v50, %v2345_v1 }
 0x41c   :  { %v2118_v24 = vmul.f32 %v3679_v4, %v1958_v27  ;;  %v1847_v47 = vadd.f32 %v2323_v46, %v1501_v56  ;;  %v2341_v27 = vadd.f32 %v2340_v61, %v2339_v13  ;;  %v1551_v61 = vpop.permute.xlu0 %1550 }
 0x41d   :  { %v2325_v11 = vpop.f32.mrf.mxu0  ;;  %v2349_v57 = vpop.f32.mrf.mxu1  ;;  %v1963_v51 = vmax.f32 %v1863_v9, 0.0 }
 0x41e   :  { %v2149_v35 = vadd.f32 %v2148_v0, %v2118_v24  ;;  %v1959_v37 = vmax.f32 %v1847_v47, 0.0  ;;  %v2326_v44 = vadd.f32 %v2325_v11, %v2324_v45  ;;  %v1962_v45 = vmax.f32 %v1860_v32, 0.0  ;;  %v2040_v47 = vpop.permute.xlu1 %2039 }
 0x41f   :  { %v2327_v26 = vpop.f32.mrf.mxu0  ;;  %v2351_v15 = vpop.f32.mrf.mxu1  ;;  %v1871_v11 = vadd.f32 %v2341_v27, %v1531_v10 }
 0x420   :  { %v2119_v38 = vmul.f32 %v2008_v41, %v1959_v37  ;;  %v1852_v14 = vadd.f32 %v2326_v44, %v3677_v58  ;;  %v1868_v41 = vadd.f32 %v2338_v43, %v3685_v18  ;;  %v2344_v58 = vadd.f32 %v2343_v2, %v2342_v31 }
 0x421   :  { %v2328_v63 = vpop.f32.mrf.mxu0  ;;  %v2352_v30 = vpop.f32.mrf.mxu1  ;;  %v2122_v13 = vmul.f32 %v3687_v5, %v1962_v45  ;;  %v2350_v37 = vadd.f32 %v2349_v57, %v2348_v17  ;;  %v1879_v18 = vadd.f32 %v2347_v20, %v1541_v62  ;;  %v2123_v2 = vmul.f32 %v2024_v34, %v1963_v51 }
 0x422   :  { %v1960_v4 = vmax.f32 %v1852_v14, 0.0  ;;  %v2329_v56 = vadd.f32 %v2328_v63, %v2327_v26  ;;  %v2150_v46 = vadd.f32 %v2149_v35, %v2119_v38  ;;  %v1965_v49 = vmax.f32 %v1871_v11, 0.0  ;;  %v2048_v50 = vpop.permute.xlu1 %2047  ;;  %v1561_v63 = vpop.permute.xlu0 %1560 }
 0x423   :  { %v2354_v25 = vpop.f32.mrf.mxu1  ;;  %v2353_v1 = vadd.f32 %v2352_v30, %v2351_v15  ;;  %v1884_v5 = vadd.f32 %v2350_v37, %v3693_v48  ;;  %v1967_v43 = vmax.f32 %v1879_v18, 0.0 }
 0x424   :  { %v2120_v40 = vmul.f32 %v3683_v33, %v1960_v4  ;;  %v1855_v42 = vadd.f32 %v2329_v56, %v1511_v28  ;;  %v1964_v33 = vmax.f32 %v1868_v41, 0.0  ;;  %v1876_v28 = vadd.f32 %v2344_v58, %v3689_v29 }
 0x425   :  { %v2355_v0 = vpop.f32.mrf.mxu1  ;;  %v2125_v17 = vmul.f32 %v2032_v54, %v1965_v49  ;;  %v1887_v4 = vadd.f32 %v2353_v1, %v1551_v61  ;;  %v1968_v30 = vmax.f32 %v1884_v5, 0.0  ;;  %v2127_v27 = vmul.f32 %v2040_v47, %v1967_v43 }
 0x426   :  { %v2151_v24 = vadd.f32 %v2150_v46, %v2120_v40  ;;  %v1961_v16 = vmax.f32 %v1855_v42, 0.0  ;;  %v2356_v38 = vadd.f32 %v2355_v0, %v2354_v25  ;;  %v1966_v14 = vmax.f32 %v1876_v28, 0.0  ;;  %v1571_v0 = vpop.permute.xlu0 %1570 }
 0x427   :  { %v2357_v52 = vpop.f32.mrf.mxu1  ;;  %v1969_v48 = vmax.f32 %v1887_v4, 0.0  ;;  %v2128_v58 = vmul.f32 %v3699_v3, %v1968_v30 }
 0x428   :  { %v2121_v55 = vmul.f32 %v3725_v22, %v1961_v16  ;;  %v2124_v22 = vmul.f32 %v3691_v59, %v1964_v33  ;;  %v1892_v34 = vadd.f32 %v2356_v38, %v3697_v53  ;;  %v2126_v15 = vmul.f32 %v3695_v39, %v1966_v14  ;;  %v2056_v59 = vpop.permute.xlu1 %2055 }
 0x429   :  { %v2358_v35 = vpop.f32.mrf.mxu1  ;;  %v2129_v20 = vmul.f32 %v2048_v50, %v1969_v48 }
 0x42a   :  { %v2152_v44 = vadd.f32 %v2151_v24, %v2121_v55  ;;  %v2359_v56 = vadd.f32 %v2358_v35, %v2357_v52  ;;  %v1970_v54 = vmax.f32 %v1892_v34, 0.0  ;;  %v1581_v37 = vpop.permute.xlu0 %1580 }
 0x42b   :  { %v2360_v31 = vpop.f32.mrf.mxu1 }
 0x42c   :  { %v2153_v26 = vadd.f32 %v2152_v44, %v2122_v13  ;;  %v1895_v42 = vadd.f32 %v2359_v56, %v1561_v63  ;;  %v2064_v47 = vpop.permute.xlu1 %2063  ;;  %v2130_v55 = vmul.f32 %v3703_v60, %v1970_v54 }
 0x42d   :  { %v2361_v10 = vpop.f32.mrf.mxu1 }
 0x42e   :  { %v2154_v32 = vadd.f32 %v2153_v26, %v2123_v2  ;;  %v2362_v25 = vadd.f32 %v2361_v10, %v2360_v31  ;;  %v1971_v51 = vmax.f32 %v1895_v42, 0.0 }
 0x42f   :  { %v2363_v29 = vpop.f32.mrf.mxu1 }
 0x430   :  { %v2155_v57 = vadd.f32 %v2154_v32, %v2124_v22  ;;  %v1900_v53 = vadd.f32 %v2362_v25, %v3701_v21  ;;  %v2131_v18 = vmul.f32 %v2056_v59, %v1971_v51  ;;  %v2072_v38 = vpop.permute.xlu1 %2071  ;;  %v1591_v32 = vpop.permute.xlu0 %1590  ;;  %v3875_v51 = vld [vmem:[#allocation52_spill] sm:$0xff] }
 0x431   :  { %v2364_v9 = vpop.f32.mrf.mxu1 }
 0x432   :  { %v2156_v62 = vadd.f32 %v2155_v57, %v2125_v17  ;;  %v2365_v45 = vadd.f32 %v2364_v9, %v2363_v29  ;;  %v1972_v35 = vmax.f32 %v1900_v53, 0.0 }
 0x433   :  { %v2366_v46 = vpop.f32.mrf.mxu1 }
 0x434   :  { %v2157_v40 = vadd.f32 %v2156_v62, %v2126_v15  ;;  %v1903_v11 = vadd.f32 %v2365_v45, %v1571_v0  ;;  %v2132_v26 = vmul.f32 %v3707_v36, %v1972_v35  ;;  %v2080_v34 = vpop.permute.xlu1 %2079 }
 0x435   :  { %v2367_v41 = vpop.f32.mrf.mxu1 }
 0x436   :  { %v2158_v24 = vadd.f32 %v2157_v40, %v2127_v27  ;;  %v2368_v16 = vadd.f32 %v2367_v41, %v2366_v46  ;;  %v1973_v21 = vmax.f32 %v1903_v11, 0.0 }
 0x437   :  { %v2369_v39 = vpop.f32.mrf.mxu1 }
 0x438   :  { %v2159_v52 = vadd.f32 %v2158_v24, %v2128_v58  ;;  %v1908_v33 = vadd.f32 %v2368_v16, %v3705_v23  ;;  %v2133_v22 = vmul.f32 %v2064_v47, %v1973_v21  ;;  %v2088_v45 = vpop.permute.xlu1 %2087 }
 0x439   :  { %v2370_v13 = vpop.f32.mrf.mxu1 }
 0x43a   :  { %v2160_v61 = vadd.f32 %v2159_v52, %v2129_v20  ;;  %v2371_v28 = vadd.f32 %v2370_v13, %v2369_v39  ;;  %v1974_v1 = vmax.f32 %v1908_v33, 0.0 }
 0x43b   :  { %v2372_v3 = vpop.f32.mrf.mxu1 }
 0x43c   :  { %v2161_v44 = vadd.f32 %v2160_v61, %v2130_v55  ;;  %v1911_v31 = vadd.f32 %v2371_v28, %v1581_v37  ;;  %v2134_v43 = vmul.f32 %v3711_v12, %v1974_v1  ;;  %v2096_v47 = vpop.permute.xlu1 %2095  ;;  %v3876_v28 = vld [vmem:[#allocation51_spill] sm:$0xff] }
 0x43d   :  { %v2373_v2 = vpop.f32.mrf.mxu1 }
 0x43e   :  { %v2162_v49 = vadd.f32 %v2161_v44, %v2131_v18  ;;  %v2374_v50 = vadd.f32 %v2373_v2, %v2372_v3  ;;  %v1975_v14 = vmax.f32 %v1911_v31, 0.0 }
 0x43f   :  { %v2375_v60 = vpop.f32.mrf.mxu1 }
 0x440   :  { %v2163_v10 = vadd.f32 %v2162_v49, %v2132_v26  ;;  %v1916_v23 = vadd.f32 %v2374_v50, %v3709_v7  ;;  %v2135_v56 = vmul.f32 %v2072_v38, %v1975_v14  ;;  %v1601_v7 = vpop.permute.xlu0 %1600  ;;  %v2100_v31 = vpop.permute.xlu1 %2099  ;;  %v3877_v26 = vld [vmem:[#allocation24_spill] sm:$0xff] }
 0x441   :  { %v2376_v5 = vpop.f32.mrf.mxu1 }
 0x442   :  { %v2164_v63 = vadd.f32 %v2163_v10, %v2133_v22  ;;  %v1976_v29 = vmax.f32 %v1916_v23, 0.0  ;;  %v2377_v17 = vadd.f32 %v2376_v5, %v2375_v60 }
 0x443   :  { %v2378_v57 = vpop.f32.mrf.mxu1 }
 0x444   :  { %v2165_v4 = vadd.f32 %v2164_v63, %v2134_v43  ;;  %v1919_v36 = vadd.f32 %v2377_v17, %v1591_v32  ;;  %v2136_v30 = vmul.f32 %v3715_v19, %v1976_v29  ;;  %v1611_v53 = vpop.permute.xlu0 %1610  ;;  %v1631_v14 = vpop.permute.xlu1 %1630 }
 0x445   :  { %v2379_v9 = vpop.f32.mrf.mxu1 }
 0x446   :  { %v2166_v15 = vadd.f32 %v2165_v4, %v2135_v56  ;;  %v1977_v62 = vmax.f32 %v1919_v36, 0.0  ;;  %v2380_v25 = vadd.f32 %v2379_v9, %v2378_v57 }
 0x447   :  { %v2381_v59 = vpop.f32.mrf.mxu1 }
 0x448   :  { %v2167_v27 = vadd.f32 %v2166_v15, %v2136_v30  ;;  %v2137_v46 = vmul.f32 %v2080_v34, %v1977_v62  ;;  %v1924_v48 = vadd.f32 %v2380_v25, %v3713_v6  ;;  %v1621_v35 = vpop.permute.xlu0 %1620  ;;  %v2108_v34 = vpop.permute.xlu1 %2107 }
 0x449   :  { %v2382_v12 = vpop.f32.mrf.mxu1 }
 0x44a   :  { %v1978_v40 = vmax.f32 %v1924_v48, 0.0  ;;  %v2383_v42 = vadd.f32 %v2382_v12, %v2381_v59  ;;  %v2168_v54 = vadd.f32 %v2167_v27, %v2137_v46 }
 0x44b   :  { %v2384_v0 = vpop.f32.mrf.mxu1 }
 0x44c   :  { %v2138_v41 = vmul.f32 %v3719_v8, %v1978_v40  ;;  %v1927_v58 = vadd.f32 %v2383_v42, %v1601_v7  ;;  %v1626_v38 = vpop.permute.xlu0 %1625  ;;  %v2112_v27 = vpop.permute.xlu1 %2111 }
 0x44d   :  { %v2385_v24 = vpop.f32.mrf.mxu1 }
 0x44e   :  { %v2169_v19 = vadd.f32 %v2168_v54, %v2138_v41  ;;  %v1979_v16 = vmax.f32 %v1927_v58, 0.0  ;;  %v2386_v39 = vadd.f32 %v2385_v24, %v2384_v0 }
 0x44f   :  { %v2387_v20 = vpop.f32.mrf.mxu1 }
 0x450   :  { %v2139_v52 = vmul.f32 %v2088_v45, %v1979_v16  ;;  %v1932_v11 = vadd.f32 %v2386_v39, %v3875_v51  ;;  %v2104_v57 = vpop.permute.xlu0 %2103 }
 0x451   :  { %v2388_v6 = vpop.f32.mrf.mxu1 }
 0x452   :  { %v1980_v55 = vmax.f32 %v1932_v11, 0.0  ;;  %v2389_v13 = vadd.f32 %v2388_v6, %v2387_v20  ;;  %v2170_v33 = vadd.f32 %v2169_v19, %v2139_v52 }
 0x453   :  { %v2390_v61 = vpop.f32.mrf.mxu1 }
 0x454   :  { %v2140_v37 = vmul.f32 %v3876_v28, %v1980_v55  ;;  %v1935_v8 = vadd.f32 %v2389_v13, %v1611_v53  ;;  %v2187_v41 = vpop.permute.xlu0 %2186 }
 0x455   :  { %v2391_v3 = vpop.f32.mrf.mxu1 }
 0x456   :  { %v2171_v44 = vadd.f32 %v2170_v33, %v2140_v37  ;;  %v1981_v18 = vmax.f32 %v1935_v8, 0.0  ;;  %v2392_v21 = vadd.f32 %v2391_v3, %v2390_v61 }
 0x457   :  { %v2393_v2 = vpop.f32.mrf.mxu1 }
 0x458   :  { %v2141_v49 = vmul.f32 %v2096_v47, %v1981_v18  ;;  %v1940_v1 = vadd.f32 %v2392_v21, %v3877_v26 }
 0x459   :  { %v2394_v50 = vpop.f32.mrf.mxu1 }
 0x45a   :  { %v1982_v60 = vmax.f32 %v1940_v1, 0.0  ;;  %v2395_v10 = vadd.f32 %v2394_v50, %v2393_v2  ;;  %v2172_v32 = vadd.f32 %v2171_v44, %v2141_v49 }
 0x45b   :  { %v2396_v22 = vpop.f32.mrf.mxu1 }
 0x45c   :  { %v2142_v23 = vmul.f32 %v2100_v31, %v1982_v60  ;;  %v1943_v5 = vadd.f32 %v2395_v10, %v1621_v35 }
 0x45d   :  { %v2397_v63 = vpop.f32.mrf.mxu1 }
 0x45e   :  { %v2398_v43 = vadd.f32 %v2397_v63, %v2396_v22  ;;  %v1983_v29 = vmax.f32 %v1943_v5, 0.0  ;;  %v2173_v17 = vadd.f32 %v2172_v32, %v2142_v23 }
 0x45f   :  { %v2399_v4 = vpop.f32.mrf.mxu1 }
 0x460   :  { %v1948_v56 = vadd.f32 %v2398_v43, %v1626_v38  ;;  %v2143_v9 = vmul.f32 %v2104_v57, %v1983_v29 }
 0x461   :  { %v2400_v36 = vpop.f32.mrf.mxu1 }
 0x462   :  { %v2401_v15 = vadd.f32 %v2400_v36, %v2399_v4  ;;  %v1984_v30 = vmax.f32 %v1948_v56, 0.0  ;;  %v2174_v59 = vadd.f32 %v2173_v17, %v2143_v9 }
 0x464   :  { %v1951_v62 = vadd.f32 %v2401_v15, %v1631_v14  ;;  %v2144_v25 = vmul.f32 %v2108_v34, %v1984_v30 }
 0x466   :  { %v1985_v7 = vmax.f32 %v1951_v62, 0.0  ;;  %v2175_v46 = vadd.f32 %v2174_v59, %v2144_v25 }
 0x468   :  { %v2145_v48 = vmul.f32 %v2112_v27, %v1985_v7 }
 0x46a   :  { %v2176_v12 = vadd.f32 %v2175_v46, %v2145_v48 }
 0x46c   :  { %v2177_v40 = vrot.slane %v2176_v12, 4 }
 0x46e   :  { %v2178_v42 = vadd.f32 %v2177_v40, %v2176_v12 }
 0x470   :  { %v2179_v45 = vrot.slane %v2178_v42, 2 }
 0x472   :  { %v2180_v0 = vadd.f32 %v2179_v45, %v2178_v42 }
 0x474   :  { %v2181_v54 = vrot.slane %v2180_v0, 1 }
 0x476   :  { %v2182_v58 = vadd.f32 %v2181_v54, %v2180_v0 }
 0x478   :  { %v2189_v24 = vadd.f32 %v2187_v41, %v2182_v58 }
 0x47a   :  { %2190 = vst [vmem:[#allocation9] sm:$0x1] %v2189_v24 }
 0x47b   :  { %2680 = shalt.err (!%p2677_p0)
}
 0x47c   :  { %2203 = dma.vmem_to_hbm [thread:$0]  %s2201_s25, 16, %s3761_s4, [#allocation6]  }
 0x47d   :  { %2693 = dma.done.wait [#allocation6], 16  }
 0x47e   :  { %2694 = vsyncadd [#allocation6], 4294967280 }
 0x47f   :  { %2207 = vsyncpa [#allocation5], 1 }
 0x480   :  { %2208 = vsyncpa [#allocation8], 1 }
 0x481   :  { %2209 = vsyncpa [#allocation6], 1 }

</bundles_post_ra>
